<compile_context>
chip_gen: v7x
topology: tpu7x:2x2x1
jax: 0.10.0
libtpu: 0.0.40
codegen_flags: <defaults>
</compile_context>

<pallas_src>
import functools

import jax
import jax.numpy as jnp
from jax.experimental import pallas as pl
from jax.experimental.pallas import tpu as pltpu

EPS = 1e-6          # module-level `eps` in the PyTorch source
GAMMA = 0.5         # NLFNet.gamma


def _total(a):
    """Reduce a 2-D (H, W) map to a (1, 1) value (lane reduce, then sublane)."""
    return jnp.sum(jnp.sum(a, axis=1, keepdims=True), axis=0, keepdims=True)


def nlfnet_kernel(x_ref, ah_ref, aw_ref, o_ref, *, gamma, scale, hw):
    # x_ref block: (1, 3, H, W) -- one batch element fully resident in VMEM.
    _, _, H, W = x_ref.shape

    x0 = x_ref[0, 0]                       # (H, W)
    x1 = x_ref[0, 1]
    x2 = x_ref[0, 2]

    y = (x0 + x1 + x2) * (1.0 / 3.0)       # channel mean (input to lvn1)
    d0 = x0 - x2                           # x - x[:, [2,1,0]] has channels (d0, 0, -d0)
    sq = x0 * x0 + x1 * x1 + x2 * x2       # blur(sum of squares) == sum of blur(squares)

    # ---- 9x9 circular box mean of 8 maps via circulant matmuls (MXU) ----
    maps = [x0, x1, x2, sq, y, y * y, d0, d0 * d0]
    n_maps = len(maps)
    stack = jnp.concatenate(maps, axis=0)                    # (8*H, W), sublane-aligned

    aw = aw_ref[...]                                         # (W, W), 1/ws per tap
    ah = ah_ref[...]                                         # (H, H), 1/ws per tap

    # width pass: one fused matmul for all 8 maps
    stack = jnp.dot(stack, aw,
                    preferred_element_type=jnp.float32,
                    precision=jax.lax.Precision.HIGHEST)      # (8*H, W)
    # height pass: per-map left multiply (row slices are sublane-tile aligned)
    blur = [jnp.dot(ah, stack[m * H:(m + 1) * H, :],
                    preferred_element_type=jnp.float32,
                    precision=jax.lax.Precision.HIGHEST)
            for m in range(n_maps)]                           # each (H, W)
    b_x0, b_x1, b_x2, b_sq, b_y, b_y2, b_d0, b_d02 = blur

    # ---- local variances: E[t^2] - E[t]^2 ----
    alpha = (b_sq - b_x0 * b_x0 - b_x1 * b_x1 - b_x2 * b_x2) * (1.0 / 3.0)
    beta = b_y2 - b_y * b_y
    wmap = (b_d02 - b_d0 * b_d0) * (2.0 / 3.0)                # == lvn3(x - x[:, [2,1,0]]).sum(1)/3

    # ---- NLF estimate ----
    w_sum = jnp.maximum(_total(wmap), EPS)                    # (1, 1)
    weight = jnp.exp((-gamma * hw) * wmap / w_sum)            # (H, W)
    w_sum = jnp.maximum(_total(weight), EPS)
    nlf = scale * _total(weight * (alpha - beta)) / w_sum     # (1, 1)

    # torch.nan_to_num(nlf, nan=eps): NaN -> eps, +/-inf -> finite extremes
    nlf = jnp.where(jnp.isnan(nlf), EPS, nlf)
    nlf = jnp.clip(nlf, jnp.finfo(jnp.float32).min, jnp.finfo(jnp.float32).max)

    o_ref[...] = jnp.sqrt(jnp.maximum(nlf, EPS)).reshape(1, 1, 1)


def _circulant_box(n, window_size):
    """(n, n) circulant band matrix of a length-`window_size` circular box mean."""
    r = window_size // 2
    idx = jnp.arange(n)
    dist = jnp.abs(idx[:, None] - idx[None, :])
    dist = jnp.minimum(dist, n - dist)                        # circular distance
    return (dist <= r).astype(jnp.float32) / window_size


def nlfnet_forward(x_nchw, *, window_size=9, real=False, gamma=GAMMA):
    """x_nchw: (B, 3, H, W) float32.  Returns (B,) noise-level estimates."""
    x = x_nchw.astype(jnp.float32)
    B, C, H, W = x.shape
    assert C == 3, "NLFNet expects 3-channel input"

    a_h = _circulant_box(H, window_size)
    a_w = _circulant_box(W, window_size)
    scale = 9.0 / 4.0 if real else 3.0 / 2.0

    kernel = functools.partial(nlfnet_kernel, gamma=gamma, scale=scale,
                               hw=float(H * W))
    out = pl.pallas_call(
        kernel,
        out_shape=jax.ShapeDtypeStruct((B, 1, 1), jnp.float32),
        grid=(B,),
        in_specs=[
            pl.BlockSpec((1, C, H, W), lambda b: (b, 0, 0, 0)),
            pl.BlockSpec((H, H), lambda b: (0, 0)),
            pl.BlockSpec((W, W), lambda b: (0, 0)),
        ],
        out_specs=pl.BlockSpec((1, 1, 1), lambda b: (b, 0, 0)),
        compiler_params=pltpu.CompilerParams(
            dimension_semantics=("parallel",)),
    )(x, a_h, a_w)
    return out.reshape(B)


def ref_forward(x, *, window_size=9, real=False, gamma=GAMMA):
    """Literal pure-JAX transcription of NLFNet.forward (NCHW) for validation."""
    x = x.astype(jnp.float32)
    b, c, H, W = x.shape
    r = window_size // 2

    def local_mean(t):  # depthwise 9x9 box mean with circular padding
        tp = jnp.pad(t, ((0, 0), (0, 0), (r, r), (r, r)), mode="wrap")
        s = jax.lax.reduce_window(tp, 0.0, jax.lax.add,
                                  (1, 1, window_size, window_size),
                                  (1, 1, 1, 1), "VALID")
        return s / (window_size ** 2)

    def local_var(t):
        return local_mean(t * t) - local_mean(t) ** 2

    alpha = jnp.sum(local_var(x), axis=1, keepdims=True) / 3
    beta = local_var(jnp.sum(x, axis=1, keepdims=True) / 3)
    weight = jnp.sum(local_var(x - x[:, ::-1]), axis=1, keepdims=True) / 3
    w_sum = jnp.maximum(jnp.sum(weight, axis=(1, 2, 3)), EPS)
    weight = jnp.exp(-gamma * H * W * weight / w_sum.reshape(b, 1, 1, 1))
    w_sum = jnp.maximum(jnp.sum(weight, axis=(1, 2, 3)), EPS)
    scale = 9.0 / 4.0 if real else 3.0 / 2.0
    nlf = scale * jnp.sum(weight * (alpha - beta), axis=(1, 2, 3)) / w_sum
    nlf = jnp.nan_to_num(nlf, nan=EPS)
    return jnp.sqrt(jnp.maximum(nlf, EPS))


if __name__ == "__main__":
    key = jax.random.PRNGKey(0)
    B, C, H, W = 2, 3, 16, 16
    x = jax.random.normal(key, (B, C, H, W), jnp.float32)

    out = jax.block_until_ready(nlfnet_forward(x))
    ref = jax.block_until_ready(ref_forward(x))

    assert out.shape == (B,), out.shape
    assert jnp.allclose(out, ref, rtol=1e-3, atol=1e-3), \
        f"max abs err = {jnp.max(jnp.abs(out - ref))}"

    print("KERNEL_OK")
</pallas_src>

<mosaic_0001>
module attributes {stable_mosaic.version = 11 : i64} {
  func.func @nlfnet_kernel(%arg0: i32, %arg1: memref<1x3x16x16xf32, #tpu.memory_space<vmem>>, %arg2: memref<16x16xf32, #tpu.memory_space<vmem>>, %arg3: memref<16x16xf32, #tpu.memory_space<vmem>>, %arg4: memref<1x1x1xf32, #tpu.memory_space<vmem>>) attributes {dimension_semantics = [#tpu.dimension_semantics<parallel>], iteration_bounds = array<i64: 2>, scalar_prefetch = 0 : i64, scratch_operands = 0 : i64, tpu.core_type = #tpu.core_type<tc>, window_params = [{transform_indices = @transform_0, window_bounds = array<i64: 1, 3, 16, 16>}, {pipeline_mode = #tpu.pipeline_mode<synchronous>, transform_indices = @transform_1, window_bounds = array<i64: 16, 16>}, {pipeline_mode = #tpu.pipeline_mode<synchronous>, transform_indices = @transform_2, window_bounds = array<i64: 16, 16>}, {transform_indices = @transform_3, window_bounds = array<i64: 1, 1, 1>}]} {
    %c0 = arith.constant 0 : index
    %c0_0 = arith.constant 0 : index
    %c0_1 = arith.constant 0 : index
    %c0_2 = arith.constant 0 : index
    %0 = vector.load %arg1[%c0, %c0_0, %c0_1, %c0_2] : memref<1x3x16x16xf32, #tpu.memory_space<vmem>>, vector<1x1x16x16xf32>
    %1 = vector.shape_cast %0 : vector<1x1x16x16xf32> to vector<16x16xf32>
    %c0_3 = arith.constant 0 : index
    %c1 = arith.constant 1 : index
    %c0_4 = arith.constant 0 : index
    %c0_5 = arith.constant 0 : index
    %2 = vector.load %arg1[%c0_3, %c1, %c0_4, %c0_5] : memref<1x3x16x16xf32, #tpu.memory_space<vmem>>, vector<1x1x16x16xf32>
    %3 = vector.shape_cast %2 : vector<1x1x16x16xf32> to vector<16x16xf32>
    %c0_6 = arith.constant 0 : index
    %c2 = arith.constant 2 : index
    %c0_7 = arith.constant 0 : index
    %c0_8 = arith.constant 0 : index
    %4 = vector.load %arg1[%c0_6, %c2, %c0_7, %c0_8] : memref<1x3x16x16xf32, #tpu.memory_space<vmem>>, vector<1x1x16x16xf32>
    %5 = vector.shape_cast %4 : vector<1x1x16x16xf32> to vector<16x16xf32>
    %6 = arith.addf %1, %3 : vector<16x16xf32>
    %7 = arith.addf %6, %5 : vector<16x16xf32>
    %cst = arith.constant 0.333333343 : f32
    %8 = vector.broadcast %cst : f32 to vector<16x16xf32>
    %9 = arith.mulf %7, %8 : vector<16x16xf32>
    %10 = arith.subf %1, %5 : vector<16x16xf32>
    %11 = arith.mulf %1, %1 : vector<16x16xf32>
    %12 = arith.mulf %3, %3 : vector<16x16xf32>
    %13 = arith.addf %11, %12 : vector<16x16xf32>
    %14 = arith.mulf %5, %5 : vector<16x16xf32>
    %15 = arith.addf %13, %14 : vector<16x16xf32>
    %16 = arith.mulf %9, %9 : vector<16x16xf32>
    %17 = arith.mulf %10, %10 : vector<16x16xf32>
    %18 = tpu.concatenate %1, %3, %5, %15, %9, %16, %10, %17 in 0 : vector<16x16xf32>, vector<16x16xf32>, vector<16x16xf32>, vector<16x16xf32>, vector<16x16xf32>, vector<16x16xf32>, vector<16x16xf32>, vector<16x16xf32> -> vector<128x16xf32>
    %c0_9 = arith.constant 0 : index
    %c0_10 = arith.constant 0 : index
    %19 = vector.load %arg3[%c0_9, %c0_10] : memref<16x16xf32, #tpu.memory_space<vmem>>, vector<16x16xf32>
    %c0_11 = arith.constant 0 : index
    %c0_12 = arith.constant 0 : index
    %20 = vector.load %arg2[%c0_11, %c0_12] : memref<16x16xf32, #tpu.memory_space<vmem>>, vector<16x16xf32>
    %cst_13 = arith.constant dense<0.000000e+00> : vector<128x16xf32>
    %21 = tpu.matmul %18, %19, %cst_13 {dimension_numbers = #tpu.dot_dimension_numbers<[1], [0], [0], [1], [0, 0, 1, 1], [], []>, precision = #tpu.contract_precision<fp32>} : vector<128x16xf32>, vector<16x16xf32>, vector<128x16xf32> -> vector<128x16xf32>
    %22 = vector.extract_strided_slice %21 {offsets = [0, 0], sizes = [16, 16], strides = [1, 1]} : vector<128x16xf32> to vector<16x16xf32>
    %cst_14 = arith.constant dense<0.000000e+00> : vector<16x16xf32>
    %23 = tpu.matmul %20, %22, %cst_14 {dimension_numbers = #tpu.dot_dimension_numbers<[1], [0], [0], [1], [0, 0, 1, 1], [], []>, precision = #tpu.contract_precision<fp32>} : vector<16x16xf32>, vector<16x16xf32>, vector<16x16xf32> -> vector<16x16xf32>
    %24 = vector.extract_strided_slice %21 {offsets = [16, 0], sizes = [16, 16], strides = [1, 1]} : vector<128x16xf32> to vector<16x16xf32>
    %cst_15 = arith.constant dense<0.000000e+00> : vector<16x16xf32>
    %25 = tpu.matmul %20, %24, %cst_15 {dimension_numbers = #tpu.dot_dimension_numbers<[1], [0], [0], [1], [0, 0, 1, 1], [], []>, precision = #tpu.contract_precision<fp32>} : vector<16x16xf32>, vector<16x16xf32>, vector<16x16xf32> -> vector<16x16xf32>
    %26 = vector.extract_strided_slice %21 {offsets = [32, 0], sizes = [16, 16], strides = [1, 1]} : vector<128x16xf32> to vector<16x16xf32>
    %cst_16 = arith.constant dense<0.000000e+00> : vector<16x16xf32>
    %27 = tpu.matmul %20, %26, %cst_16 {dimension_numbers = #tpu.dot_dimension_numbers<[1], [0], [0], [1], [0, 0, 1, 1], [], []>, precision = #tpu.contract_precision<fp32>} : vector<16x16xf32>, vector<16x16xf32>, vector<16x16xf32> -> vector<16x16xf32>
    %28 = vector.extract_strided_slice %21 {offsets = [48, 0], sizes = [16, 16], strides = [1, 1]} : vector<128x16xf32> to vector<16x16xf32>
    %cst_17 = arith.constant dense<0.000000e+00> : vector<16x16xf32>
    %29 = tpu.matmul %20, %28, %cst_17 {dimension_numbers = #tpu.dot_dimension_numbers<[1], [0], [0], [1], [0, 0, 1, 1], [], []>, precision = #tpu.contract_precision<fp32>} : vector<16x16xf32>, vector<16x16xf32>, vector<16x16xf32> -> vector<16x16xf32>
    %30 = vector.extract_strided_slice %21 {offsets = [64, 0], sizes = [16, 16], strides = [1, 1]} : vector<128x16xf32> to vector<16x16xf32>
    %cst_18 = arith.constant dense<0.000000e+00> : vector<16x16xf32>
    %31 = tpu.matmul %20, %30, %cst_18 {dimension_numbers = #tpu.dot_dimension_numbers<[1], [0], [0], [1], [0, 0, 1, 1], [], []>, precision = #tpu.contract_precision<fp32>} : vector<16x16xf32>, vector<16x16xf32>, vector<16x16xf32> -> vector<16x16xf32>
    %32 = vector.extract_strided_slice %21 {offsets = [80, 0], sizes = [16, 16], strides = [1, 1]} : vector<128x16xf32> to vector<16x16xf32>
    %cst_19 = arith.constant dense<0.000000e+00> : vector<16x16xf32>
    %33 = tpu.matmul %20, %32, %cst_19 {dimension_numbers = #tpu.dot_dimension_numbers<[1], [0], [0], [1], [0, 0, 1, 1], [], []>, precision = #tpu.contract_precision<fp32>} : vector<16x16xf32>, vector<16x16xf32>, vector<16x16xf32> -> vector<16x16xf32>
    %34 = vector.extract_strided_slice %21 {offsets = [96, 0], sizes = [16, 16], strides = [1, 1]} : vector<128x16xf32> to vector<16x16xf32>
    %cst_20 = arith.constant dense<0.000000e+00> : vector<16x16xf32>
    %35 = tpu.matmul %20, %34, %cst_20 {dimension_numbers = #tpu.dot_dimension_numbers<[1], [0], [0], [1], [0, 0, 1, 1], [], []>, precision = #tpu.contract_precision<fp32>} : vector<16x16xf32>, vector<16x16xf32>, vector<16x16xf32> -> vector<16x16xf32>
    %36 = vector.extract_strided_slice %21 {offsets = [112, 0], sizes = [16, 16], strides = [1, 1]} : vector<128x16xf32> to vector<16x16xf32>
    %cst_21 = arith.constant dense<0.000000e+00> : vector<16x16xf32>
    %37 = tpu.matmul %20, %36, %cst_21 {dimension_numbers = #tpu.dot_dimension_numbers<[1], [0], [0], [1], [0, 0, 1, 1], [], []>, precision = #tpu.contract_precision<fp32>} : vector<16x16xf32>, vector<16x16xf32>, vector<16x16xf32> -> vector<16x16xf32>
    %38 = arith.mulf %23, %23 : vector<16x16xf32>
    %39 = arith.subf %29, %38 : vector<16x16xf32>
    %40 = arith.mulf %25, %25 : vector<16x16xf32>
    %41 = arith.subf %39, %40 : vector<16x16xf32>
    %42 = arith.mulf %27, %27 : vector<16x16xf32>
    %43 = arith.subf %41, %42 : vector<16x16xf32>
    %cst_22 = arith.constant 0.333333343 : f32
    %44 = vector.broadcast %cst_22 : f32 to vector<16x16xf32>
    %45 = arith.mulf %43, %44 : vector<16x16xf32>
    %46 = arith.mulf %31, %31 : vector<16x16xf32>
    %47 = arith.subf %33, %46 : vector<16x16xf32>
    %48 = arith.mulf %35, %35 : vector<16x16xf32>
    %49 = arith.subf %37, %48 : vector<16x16xf32>
    %cst_23 = arith.constant 0.666666686 : f32
    %50 = vector.broadcast %cst_23 : f32 to vector<16x16xf32>
    %51 = arith.mulf %49, %50 : vector<16x16xf32>
    %cst_24 = arith.constant dense<0.000000e+00> : vector<16xf32>
    %52 = vector.multi_reduction <add>, %51, %cst_24 [1] : vector<16x16xf32> to vector<16xf32>
    %53 = vector.shape_cast %52 : vector<16xf32> to vector<16x1xf32>
    %cst_25 = arith.constant dense<0.000000e+00> : vector<1xf32>
    %54 = vector.multi_reduction <add>, %53, %cst_25 [0] : vector<16x1xf32> to vector<1xf32>
    %55 = vector.shape_cast %54 : vector<1xf32> to vector<1x1xf32>
    %cst_26 = arith.constant 9.99999997E-7 : f32
    %56 = vector.broadcast %cst_26 : f32 to vector<1x1xf32>
    %57 = arith.maximumf %55, %56 : vector<1x1xf32>
    %cst_27 = arith.constant -1.280000e+02 : f32
    %58 = vector.broadcast %cst_27 : f32 to vector<16x16xf32>
    %59 = arith.mulf %58, %51 : vector<16x16xf32>
    %60 = vector.broadcast %57 : vector<1x1xf32> to vector<16x16xf32>
    %61 = arith.divf %59, %60 : vector<16x16xf32>
    %62 = math.exp %61 : vector<16x16xf32>
    %cst_28 = arith.constant dense<0.000000e+00> : vector<16xf32>
    %63 = vector.multi_reduction <add>, %62, %cst_28 [1] : vector<16x16xf32> to vector<16xf32>
    %64 = vector.shape_cast %63 : vector<16xf32> to vector<16x1xf32>
    %cst_29 = arith.constant dense<0.000000e+00> : vector<1xf32>
    %65 = vector.multi_reduction <add>, %64, %cst_29 [0] : vector<16x1xf32> to vector<1xf32>
    %66 = vector.shape_cast %65 : vector<1xf32> to vector<1x1xf32>
    %cst_30 = arith.constant 9.99999997E-7 : f32
    %67 = vector.broadcast %cst_30 : f32 to vector<1x1xf32>
    %68 = arith.maximumf %66, %67 : vector<1x1xf32>
    %69 = arith.subf %45, %47 : vector<16x16xf32>
    %70 = arith.mulf %62, %69 : vector<16x16xf32>
    %cst_31 = arith.constant dense<0.000000e+00> : vector<16xf32>
    %71 = vector.multi_reduction <add>, %70, %cst_31 [1] : vector<16x16xf32> to vector<16xf32>
    %72 = vector.shape_cast %71 : vector<16xf32> to vector<16x1xf32>
    %cst_32 = arith.constant dense<0.000000e+00> : vector<1xf32>
    %73 = vector.multi_reduction <add>, %72, %cst_32 [0] : vector<16x1xf32> to vector<1xf32>
    %74 = vector.shape_cast %73 : vector<1xf32> to vector<1x1xf32>
    %cst_33 = arith.constant 1.500000e+00 : f32
    %75 = vector.broadcast %cst_33 : f32 to vector<1x1xf32>
    %76 = arith.mulf %75, %74 : vector<1x1xf32>
    %77 = arith.divf %76, %68 : vector<1x1xf32>
    %78 = arith.cmpf one, %77, %77 : vector<1x1xf32>
    %cst_34 = arith.constant 9.99999997E-7 : f32
    %79 = vector.broadcast %cst_34 : f32 to vector<1x1xf32>
    %80 = arith.select %78, %79, %77 : vector<1x1xi1>, vector<1x1xf32>
    %cst_35 = arith.constant -3.40282347E+38 : f32
    %cst_36 = arith.constant 3.40282347E+38 : f32
    %81 = vector.broadcast %cst_35 : f32 to vector<1x1xf32>
    %82 = arith.maximumf %81, %80 : vector<1x1xf32>
    %83 = vector.broadcast %cst_36 : f32 to vector<1x1xf32>
    %84 = arith.minimumf %83, %82 : vector<1x1xf32>
    %cst_37 = arith.constant 9.99999997E-7 : f32
    %85 = vector.broadcast %cst_37 : f32 to vector<1x1xf32>
    %86 = arith.maximumf %84, %85 : vector<1x1xf32>
    %87 = math.sqrt %86 : vector<1x1xf32>
    %88 = vector.shape_cast %87 : vector<1x1xf32> to vector<1x1x1xf32>
    %c0_38 = arith.constant 0 : index
    %c0_39 = arith.constant 0 : index
    %c0_40 = arith.constant 0 : index
    %89 = vector.load %arg4[%c0_38, %c0_39, %c0_40] : memref<1x1x1xf32, #tpu.memory_space<vmem>>, vector<1x1x1xf32>
    tpu.vector_store %arg4[%c0_38, %c0_39, %c0_40], %88 {strides = array<i32>} : memref<1x1x1xf32, #tpu.memory_space<vmem>>, vector<1x1x1xf32>,
    return
  }
  func.func @transform_0(%arg0: i32) -> (i32, i32, i32, i32) {
    %c0_i32 = arith.constant 0 : i32
    %c0_i32_0 = arith.constant 0 : i32
    %c0_i32_1 = arith.constant 0 : i32
    %c0_i32_2 = arith.constant 0 : i32
    return %arg0, %c0_i32, %c0_i32_0, %c0_i32_1 : i32, i32, i32, i32
  }
  func.func @transform_1(%arg0: i32) -> (i32, i32) {
    %c0_i32 = arith.constant 0 : i32
    %c0_i32_0 = arith.constant 0 : i32
    %c0_i32_1 = arith.constant 0 : i32
    return %c0_i32, %c0_i32_0 : i32, i32
  }
  func.func @transform_2(%arg0: i32) -> (i32, i32) {
    %c0_i32 = arith.constant 0 : i32
    %c0_i32_0 = arith.constant 0 : i32
    %c0_i32_1 = arith.constant 0 : i32
    return %c0_i32, %c0_i32_0 : i32, i32
  }
  func.func @transform_3(%arg0: i32) -> (i32, i32, i32) {
    %c0_i32 = arith.constant 0 : i32
    %c0_i32_0 = arith.constant 0 : i32
    %c0_i32_1 = arith.constant 0 : i32
    return %arg0, %c0_i32, %c0_i32_0 : i32, i32, i32
  }
}

</mosaic_0001>

<bundles_post_ra>
// kernel: tpu_custom_call.1
= control target key start
LH: loop header
LB: loop body
LE: loop exit
PB: predicated region body
PF: predicated region fallthrough
CT: control target
= control target key end

     0   :  { %8 = vsyncpa [#allocation3], 0  ;;  %s7784_s0 = inlined_call_operand.hbm [shape: f32[2,3,16,16], index: 0, kind: input, shape index: {}]   ;;  %s7785_s1 = inlined_call_operand.hbm [shape: f32[16,16], index: 1, kind: input, shape index: {}]   ;;  %s7786_s2 = inlined_call_operand.hbm [shape: f32[16,16], index: 2, kind: input, shape index: {}]   ;;  %s7787_s3 = inlined_call_operand.vmem [shape: f32[2,1,1], index: 3, kind: output, shape index: {}]  }
   0x1   :  { %10 = vsyncpa [#allocation3 + $0x1], 0 }
   0x2   :  { %11 = vsyncpa [#allocation5], 0  ;;  %s7020_s12 = smov 0   ;;  %s7022_s13 = smov 0  }
   0x3   :  { %s7024_s14 = smov 0   ;;  %s7026_s15 = smov 0  }
   0x4 LB: > { %s7039_s16 = sadd.s32 4294967295, %s6993_s15   ;;  %p37_p0 = scmp.ne.s32.totalorder %s6985_s13, %s6981_s12  ;;  %s6993_s15 = sphi %s7026_s15, %s7802_s15   ;;  %s6989_s14 = sphi %s7024_s14, %s7801_s14   ;;  %s6985_s13 = sphi %s7022_s13, %s7800_s13   ;;  %s6981_s12 = sphi %s7020_s12, %s7799_s12  }
   0x5   : > { %p7788_p1 = scmp.eq.s32.totalorder %s7039_s16, 0  ;;  %p5599_p2 = scmp.ge.s32.totalorder %s6993_s15, 1 }
   0x6   : > { %p116_p3 = scmp.lt.s32.totalorder %s6993_s15, 3  ;;  %s6995_s19 = smov [#allocation4]  }
   0x7   : > { %p7047_p4 = por %p7788_p1, %p37_p0  ;;  %s128_s20 = sshll.u32 %s6995_s19, 4  ;;  %s129_s20 = int_to_ptr.vmem [resolvable:$true] %s128_s20 }
   0x8   : > { %p7051_p5 = pnand %p5599_p2, %p116_p3  ;;  %s6996_s22 = smov [#allocation6]  }
   0x9   : > { %s7791_s17 = scalar_select %p7047_p4, 1, 0 }
   0xa   : > { %s7792_s18 = scalar_select %p7051_p5, 1, 0 }
   0xb   : > { %p6807_p6 = pneg %p7051_p5  ;;  %s141_s23 = sshll.u32 %s6996_s22, 4  ;;  %s7063_s23 = int_to_ptr.vmem [resolvable:$true] %s141_s23 }
   0xc   : > { %s6869_s26 = scalar_lea.hbm %s7785_s1, 256 }
   0xd   : > { %p7059_p7 = pnand %p6807_p6, %p7788_p1  ;;  %p6870_p8 = scmp.ne.s32.totalorder %s7785_s1, %s6869_s26 }
   0xe   : > { %p6876_p12 = scmp.lt.u32.totalorder %s6869_s26, %s7785_s1 }
   0xf   : > { %p6871_p9 = pneg %p7059_p7 }
  0x11   : > { %p6872_p10 = pnand %p6871_p9, %p6870_p8 }
  0x13   : > { %p6873_p11 = pneg %p6872_p10 }
  0x15   : > { %p6878_p13 = pnand %p6876_p12, %p6873_p11 }
  0x17   : > { %6881 = shalt.err (!%p6878_p13)
}
  0x18   : > { %s6882_s4 = scalar_lea.vmem %s129_s20, 256  ;;  %p6890_p6 = scmp.lt.s32.totalorder %s129_s20, %s129_s20 }
  0x19   : > { %p6883_p0 = scmp.ne.s32.totalorder %s129_s20, %s6882_s4  ;;  %p6891_p1 = scmp.lt.s32.totalorder %s6882_s4, %s6882_s4 }
  0x1b   : > { %p6885_p2 = pnand %p6883_p0, %p6871_p9  ;;  %p6892_p4 = por %p6891_p1, %p6890_p6 }
  0x1d   : > { %p6886_p3 = pneg %p6885_p2 }
  0x1f   : > { %p6893_p5 = pnand %p6892_p4, %p6886_p3 }
  0x21   : > { %6896 = shalt.err (!%p6893_p5)
}
  0x22   : > { %s6997_s5 = smov 128   ;;  %s6998_s6 = smov 8  }
  0x23   : > { %6810 = dma.hbm_to_vmem [thread:$0]  (!%p7059_p7), %s7785_s1, 256, %s129_s20, [#allocation5], %s6997_s5, %s6997_s5, %s6998_s6  }
  0x24   : > { %s6897_s11 = scalar_lea.hbm %s7786_s2, 256 }
  0x25   : > { %p6898_p1 = scmp.ne.s32.totalorder %s7786_s2, %s6897_s11  ;;  %p6904_p8 = scmp.lt.u32.totalorder %s6897_s11, %s7786_s2 }
  0x27   : > { %p6900_p4 = pnand %p6898_p1, %p6871_p9 }
  0x29   : > { %p6901_p5 = pneg %p6900_p4 }
  0x2b   : > { %p6906_p10 = pnand %p6904_p8, %p6901_p5 }
  0x2d   : > { %6909 = shalt.err (!%p6906_p10)
}
  0x2e   : > { %s6910_s20 = scalar_lea.vmem %s7063_s23, 256  ;;  %p6918_p0 = scmp.lt.s32.totalorder %s7063_s23, %s7063_s23 }
  0x2f   : > { %p6911_p11 = scmp.ne.s32.totalorder %s7063_s23, %s6910_s20  ;;  %p6919_p2 = scmp.lt.s32.totalorder %s6910_s20, %s6910_s20 }
  0x31   : > { %p6913_p12 = pnand %p6911_p11, %p6871_p9  ;;  %p6920_p3 = por %p6919_p2, %p6918_p0 }
  0x33   : > { %p6914_p13 = pneg %p6913_p12 }
  0x35   : > { %p6921_p6 = pnand %p6920_p3, %p6914_p13 }
  0x37   : > { %6924 = shalt.err (!%p6921_p6)
}
  0x38   : > { %6813 = dma.hbm_to_vmem [thread:$0]  (!%p7059_p7), %s7786_s2, 256, %s7063_s23, [#allocation5], %s6997_s5, %s6997_s5, %s6998_s6  }
  0x39   : > { %s7119_s27 = sadd.s32 1, %s6993_s15   ;;  %s24_s21 = sadd.s32 1, %s6989_s14 }
  0x3a   : > { %s21_s28 = ssub.s32 %s6993_s15, %s7119_s27  ;;  %p31_p9 = scmp.ne.s32.totalorder %s6989_s14, %s6985_s13 }
  0x3b   : > { %p22_p1 = scmp.eq.s32.totalorder %s21_s28, 0  ;;  %p32_p4 = scmp.eq.s32.totalorder %s6993_s15, 0 }
  0x3c   : > { %p6820_p5 = scmp.lt.s32.totalorder %s6993_s15, 2  ;;  %s155_s29 = sand.u32 1, %s6989_s14  }
  0x3d   : > { %s7130_s30 = scalar_select %p22_p1, %s6989_s14, %s24_s21  }
  0x3e   : > { %p33_p8 = por %p32_p4, %p31_p9  ;;  %s6794_s4 = smul.u32 48, %s155_s29 }
  0x3f   : > { %s6795_s7 = smul.u32 768, %s6993_s15  ;;  %s7144_s15 = scalar_lea.sflag [#allocation3], %s155_s29 }
  0x40   : > { %p7133_p10 = pnand %p6820_p5, %p33_p8  ;;  %s159_s11 = scalar_lea.vmem [#allocation2], %s6794_s4 }
  0x41   : > { %s7140_s10 = scalar_lea.hbm %s7784_s0, %s6795_s7  ;;  %s166_s12 = sshll.u32 %s159_s11, 4  ;;  %s7142_s12 = int_to_ptr.vmem [resolvable:$true] %s166_s12 }
  0x42   : > { %s6925_s19 = scalar_lea.hbm %s7140_s10, 768  ;;  %p6927_p11 = pneg %p7133_p10 }
  0x43   : > { %p6926_p7 = scmp.ne.s32.totalorder %s7140_s10, %s6925_s19  ;;  %s6930_s20 = scalar_lea.hbm %s7784_s0, 1536 }
  0x44   : > { %p6931_p0 = scmp.lt.u32.totalorder %s7140_s10, %s7784_s0  ;;  %p6932_p2 = scmp.lt.u32.totalorder %s6930_s20, %s6925_s19 }
  0x45   : > { %p6928_p12 = pnand %p6927_p11, %p6926_p7  ;;  %p6934_p6 = scmp.lt.u32.totalorder %s6925_s19, %s7140_s10 }
  0x46   : > { %p6933_p3 = por %p6932_p2, %p6931_p0 }
  0x47   : > { %p6929_p13 = pneg %p6928_p12 }
  0x48   : > { %p6935_p9 = por %p6934_p6, %p6933_p3 }
  0x4a   : > { %p6936_p1 = pnand %p6935_p9, %p6929_p13 }
  0x4c   : > { %6939 = shalt.err (!%p6936_p1)
}
  0x4d   : > { %s6940_s21 = scalar_lea.vmem %s7142_s12, 768  ;;  %s6999_s28 = smov [#allocation2]  }
  0x4e   : > { %p6941_p4 = scmp.ne.s32.totalorder %s7142_s12, %s6940_s21  ;;  %s6945_s29 = sshll.u32 %s6999_s28, 4  ;;  %s6946_s29 = int_to_ptr.vmem [resolvable:$false] %s6945_s29 }
  0x4f   : > { %s6947_s4 = scalar_lea.vmem %s6946_s29, 1536  ;;  %p6948_p7 = scmp.lt.s32.totalorder %s7142_s12, %s6946_s29 }
  0x50   : > { %p6943_p5 = pnand %p6941_p4, %p6927_p11  ;;  %p6949_p12 = scmp.lt.s32.totalorder %s6947_s4, %s6940_s21 }
  0x52   : > { %p6944_p8 = pneg %p6943_p5  ;;  %p6950_p0 = por %p6949_p12, %p6948_p7 }
  0x54   : > { %p6951_p2 = pnand %p6950_p0, %p6944_p8 }
  0x56   : > { %6954 = shalt.err (!%p6951_p2)
}
  0x57   : > { %6817 = dma.hbm_to_vmem [thread:$0]  (!%p7133_p10), %s7140_s10, 768, %s7142_s12, %s7144_s15, %s6997_s5, %s6997_s5, %s6998_s6  }
  0x58   : > { %p7795_p11 = scmp.ne.s32.totalorder %s7792_s18, 0 }
  0x59   : > { %s180_s7 = sand.u32 (!%p7795_p11), 1, %s6985_s13   ;;  %p7796_p13 = scmp.ne.s32.totalorder (!%p7795_p11), %s7791_s17, 0 }
  0x5a   : > { %178 = sbr.rel (%p7795_p11) target bundleno = 1452 (0x5ac), region = 32  ;;  %s181_s9 = scalar_lea.sflag (!%p7795_p11), [#allocation3], %s180_s7 }
  0x5b   : > { %s6796_s23 = smul.u32 (!%p7795_p11), 48, %s180_s7 }
  0x5d   : > { %s184_s11 = scalar_lea.vmem (!%p7795_p11), [#allocation2], %s6796_s23 }
  0x61   : > { %6972 = dma.done.wait (%p7796_p13), %s181_s9, 768  }
  0x62   : > { %6974 = vsyncadd (%p7796_p13), %s181_s9, 4294966528  ;;  %p7797_p3 = scmp.eq.s32.totalorder %s7039_s16, 0 }
  0x64   : > { %6976 = dma.done.wait (%p7797_p3), [#allocation5], 512   ;;  %p7798_p6 = pmov %p7797_p3 }
  0x65   : > { %vm250_vm0 = vcmask 130048   ;;  %v246_v0 = vld [vmem:[#allocation6] sm:$0xff]  ;;  %v247_v1 = vld [vmem:[#allocation6 + $0x8] sm:$0xff]  ;;  %p213_p10 = scmp.lt.s32.totalorder %s7039_s16, 1  ;;  %vm5518_vm2 = vcmask 0  }
  0x66   : > { %6978 = vsyncadd (%p7798_p6), [#allocation5], 4294966784  ;;  %v7186_v2 = vld [vmem:[%s184_s11] sm:$0xff]  ;;  %v300_v3 = vand.u32 4294901760, %v246_v0  ;;  %v303_v4 = vand.u32 4294901760, %v247_v1  ;;  %v7192_v7 = vld [vmem:[%s184_s11 + $0x8] sm:$0xff] }
  0x67   : > { %v232_v5 = vmul.f32 %v7186_v2, %v7186_v2  ;;  %v252_v6 = vsel %vm250_vm0, %v7186_v2, 0  ;;  %v5607_v8 = vld [vmem:[%s184_s11 + $0x10] sm:$0xff]  ;;  %v5608_v9 = vld [vmem:[%s184_s11 + $0x18] sm:$0xff]  ;;  %v255_v11 = vsel %vm250_vm0, %v7192_v7, 0  ;;  %v5609_v14 = vld [vmem:[%s184_s11 + $0x20] sm:$0xff]  ;;  %v233_v58 = vmul.f32 %v7192_v7, %v7192_v7  ;;  %s7804_s16 = smov (!%p213_p10, %s7039_s16), 1 }
  0x68   : > { %v7194_v10 = vand.u32 4294901760, %v252_v6  ;;  %v234_v12 = vmul.f32 %v5607_v8, %v5607_v8  ;;  %v258_v13 = vsel %vm250_vm0, %v5607_v8, 0  ;;  %v7199_v15 = vpack.c.bf16 %v303_v4, %v300_v3  ;;  %v5610_v23 = vld [vmem:[%s184_s11 + $0x28] sm:$0xff]  ;;  %s215_s5 = scalar_lea.vmem %s7787_s3, %s7804_s16 }
  0x69   : > { %v7201_v16 = vand.u32 4294901760, %v255_v11  ;;  %v7203_v17 = vand.u32 4294901760, %v258_v13  ;;  %v235_v18 = vmul.f32 %v5608_v9, %v5608_v9  ;;  %v261_v20 = vsel %vm250_vm0, %v5608_v9, 0 }
  0x6a   : > { %v7206_v19 = vsub.f32 %v252_v6, %v7194_v10  ;;  %v7209_v21 = vsub.f32 %v246_v0, %v300_v3  ;;  %v7211_v22 = vsub.f32 %v247_v1, %v303_v4  ;;  %6419 = vmatprep.subr.bf16.mxu0 %v7199_v15  ;;  %v7220_v26 = vand.u32 4294901760, %v261_v20 }
  0x6b   : > { %v7215_v24 = vsub.f32 %v255_v11, %v7201_v16  ;;  %v7218_v25 = vsub.f32 %v258_v13, %v7203_v17  ;;  %v264_v27 = vsel %vm250_vm0, %v5609_v14, 0  ;;  %6421 = vmatpush3.bf16.msra.mxu0 %v7199_v15  ;;  %v267_v35 = vsel %vm250_vm0, %v5610_v23, 0 }
  0x6c   : > { %v368_v28 = vand.u32 4294901760, %v7206_v19  ;;  %v529_v29 = vand.u32 4294901760, %v7209_v21  ;;  %v536_v30 = vand.u32 4294901760, %v7211_v22  ;;  %v7227_v31 = vand.u32 4294901760, %v264_v27 }
  0x6d   : > { %v378_v32 = vand.u32 4294901760, %v7215_v24  ;;  %v388_v33 = vand.u32 4294901760, %v7218_v25  ;;  %v7232_v34 = vsub.f32 %v261_v20, %v7220_v26  ;;  %v7254_v43 = vand.u32 4294901760, %v267_v35 }
  0x6e   : > { %v369_v36 = vsub.f32 %v7206_v19, %v368_v28  ;;  %v530_v37 = vsub.f32 %v7209_v21, %v529_v29  ;;  %v537_v38 = vsub.f32 %v7211_v22, %v536_v30  ;;  %v7245_v39 = vsub.f32 %v264_v27, %v7227_v31 }
  0x6f   : > { %v379_v40 = vsub.f32 %v7215_v24, %v378_v32  ;;  %v389_v41 = vsub.f32 %v7218_v25, %v388_v33  ;;  %v398_v42 = vand.u32 4294901760, %v7232_v34  ;;  %v7261_v51 = vsub.f32 %v267_v35, %v7254_v43 }
  0x70   : > { %v370_v44 = vand.u32 4294901760, %v369_v36  ;;  %v531_v45 = vand.u32 4294901760, %v530_v37  ;;  %v538_v46 = vand.u32 4294901760, %v537_v38  ;;  %v408_v47 = vand.u32 4294901760, %v7245_v39 }
  0x71   : > { %v380_v48 = vand.u32 4294901760, %v379_v40  ;;  %v390_v49 = vand.u32 4294901760, %v389_v41  ;;  %v399_v50 = vsub.f32 %v7232_v34, %v398_v42  ;;  %v236_v54 = vadd.f32 %v234_v12, %v232_v5 }
  0x72   : > { %5918 = vmatprep.mubr.f32.mxu0 %v370_v44  ;;  %v6422_v52 = vpack.c.bf16 %v538_v46, %v531_v45  ;;  %v409_v53 = vsub.f32 %v7245_v39, %v408_v47  ;;  %v238_v55 = vmul.f32 %v5609_v14, %v5609_v14  ;;  %v418_v57 = vand.u32 4294901760, %v7261_v51 }
  0x73   : > { %5919 = vmatmul.mubr.f32.vlgmr.msra.gmra.mrb[0].mxu0 %v380_v48  ;;  %v400_v56 = vand.u32 4294901760, %v399_v50  ;;  %v239_v59 = vmul.f32 %v5610_v23, %v5610_v23  ;;  %v224_v62 = vadd.f32 %v5607_v8, %v7186_v2  ;;  %v225_v63 = vadd.f32 %v5608_v9, %v7192_v7 }
  0x74   : > { %5921 = vmatprep.mubr.f32.mxu0 %v390_v49  ;;  %6423 = vmatprep.subr.bf16.mxu0 %v6422_v52  ;;  %v410_v60 = vand.u32 4294901760, %v409_v53  ;;  %v240_v61 = vadd.f32 %v238_v55, %v236_v54  ;;  %v419_v0 = vsub.f32 %v7261_v51, %v418_v57  ;;  %v237_v1 = vadd.f32 %v235_v18, %v233_v58 }
  0x75   : > { %6425 = vmatpush3.bf16.msra.mxu0 %v6422_v52  ;;  %v230_v3 = vsub.f32 %v7186_v2, %v5609_v14  ;;  %v231_v4 = vsub.f32 %v7192_v7, %v5610_v23  ;;  %v226_v6 = vadd.f32 %v5609_v14, %v224_v62  ;;  %v227_v11 = vadd.f32 %v5610_v23, %v225_v63 }
  0x76   : > { %v270_v5 = vsel %vm250_vm0, %v240_v61, 0  ;;  %v7279_v12 = vpack.c.bf16 %v7211_v22, %v7209_v21  ;;  %v420_v8 = vand.u32 4294901760, %v419_v0  ;;  %v241_v13 = vadd.f32 %v239_v59, %v237_v1 }
  0x77   : > { %5922 = vmatmul.mubr.f32.gmra.mrb[2].mxu0 %v400_v56  ;;  %v7281_v9 = vand.u32 4294901760, %v270_v5  ;;  %v288_v20 = vsel %vm250_vm0, %v230_v3, 0  ;;  %v228_v18 = vmul.f32 0.33333334, %v226_v6  ;;  %v229_v2 = vmul.f32 0.33333334, %v227_v11 }
  0x78   : > { %5924 = vmatprep.mubr.f32.mxu0 %v410_v60  ;;  %v7284_v27 = vand.u32 4294901760, %v288_v20  ;;  %v291_v7 = vsel %vm250_vm0, %v231_v4, 0  ;;  %6427 = vmatprep.subr.bf16.mxu0 %v7279_v12  ;;  %v273_v23 = vsel %vm250_vm0, %v241_v13, 0  ;;  %v244_v52 = vmul.f32 %v230_v3, %v230_v3 }
  0x79   : > { %v7289_v14 = vsub.f32 %v270_v5, %v7281_v9  ;;  %v7292_v35 = vand.u32 4294901760, %v291_v7  ;;  %v7294_v36 = vand.u32 4294901760, %v273_v23  ;;  %v276_v37 = vsel %vm250_vm0, %v228_v18, 0 }
  0x7a   : > { %v279_v38 = vsel %vm250_vm0, %v229_v2, 0  ;;  %v242_v40 = vmul.f32 %v228_v18, %v228_v18  ;;  %v7299_v44 = vand.u32 4294901760, %v276_v37  ;;  %v243_v46 = vmul.f32 %v229_v2, %v229_v2 }
  0x7b   : > { %5925 = vmatmul.mubr.f32.gmra.mrb[4].mxu0 %v420_v8  ;;  %v428_v41 = vand.u32 4294901760, %v7289_v14  ;;  %v7301_v45 = vand.u32 4294901760, %v279_v38  ;;  %v7304_v48 = vsub.f32 %v273_v23, %v7294_v36  ;;  %v7308_v50 = vsub.f32 %v288_v20, %v7284_v27 }
  0x7c   : > { %v282_v49 = vsel %vm250_vm0, %v242_v40, 0  ;;  %v7314_v54 = vsub.f32 %v276_v37, %v7299_v44  ;;  %v285_v59 = vsel %vm250_vm0, %v243_v46, 0  ;;  %v7324_v60 = vsub.f32 %v291_v7, %v7292_v35 }
  0x7d   : > { %v429_v53 = vsub.f32 %v7289_v14, %v428_v41  ;;  %v7317_v55 = vsub.f32 %v279_v38, %v7301_v45  ;;  %v7319_v56 = vand.u32 4294901760, %v282_v49  ;;  %v438_v58 = vand.u32 4294901760, %v7304_v48 }
  0x7e   : > { %v448_v62 = vand.u32 4294901760, %v7314_v54  ;;  %v7334_v3 = vand.u32 4294901760, %v285_v59  ;;  %v488_v5 = vand.u32 4294901760, %v7308_v50  ;;  %v294_v13 = vsel %vm250_vm0, %v244_v52, 0 }
  0x7f   : > { %v430_v61 = vand.u32 4294901760, %v429_v53  ;;  %v458_v63 = vand.u32 4294901760, %v7317_v55  ;;  %v7329_v0 = vsub.f32 %v282_v49, %v7319_v56  ;;  %v439_v1 = vsub.f32 %v7304_v48, %v438_v58 }
  0x80   : > { %v449_v6 = vsub.f32 %v7314_v54, %v448_v62  ;;  %v7346_v18 = vsub.f32 %v285_v59, %v7334_v3  ;;  %v498_v23 = vand.u32 4294901760, %v7324_v60  ;;  %v7352_v37 = vand.u32 4294901760, %v294_v13 }
  0x81   : > { %5927 = vmatprep.mubr.f32.mxu0 %v430_v61  ;;  %v459_v11 = vsub.f32 %v7317_v55, %v458_v63  ;;  %v468_v8 = vand.u32 4294901760, %v7329_v0  ;;  %v440_v20 = vand.u32 4294901760, %v439_v1  ;;  %v245_v46 = vmul.f32 %v231_v4, %v231_v4 }
  0x82   : > { %v450_v2 = vand.u32 4294901760, %v449_v6  ;;  %v478_v40 = vand.u32 4294901760, %v7346_v18  ;;  %v7359_v49 = vpack.c.bf16 %v536_v30, %v529_v29  ;;  %v489_v53 = vsub.f32 %v7308_v50, %v488_v5 }
  0x83   : > { %v469_v7 = vsub.f32 %v7329_v0, %v468_v8  ;;  %5928 = vmatmul.mubr.f32.gmra.mrb[6].mxu0 %v440_v20  ;;  %v460_v38 = vand.u32 4294901760, %v459_v11  ;;  %v7365_v59 = vsub.f32 %v294_v13, %v7352_v37  ;;  %v297_v4 = vsel %vm250_vm0, %v245_v46, 0 }
  0x84   : > { %5930 = vmatprep.mubr.f32.mxu0 %v450_v2  ;;  %v479_v61 = vsub.f32 %v7346_v18, %v478_v40  ;;  %v7372_v22 = vand.u32 4294901760, %v297_v4  ;;  %v499_v30 = vsub.f32 %v7324_v60, %v498_v23  ;;  %v490_v1 = vand.u32 4294901760, %v489_v53 }
  0x85   : > { %v470_v52 = vand.u32 4294901760, %v469_v7  ;;  %v508_v21 = vand.u32 4294901760, %v7365_v59 }
  0x86   : > { %v480_v29 = vand.u32 4294901760, %v479_v61  ;;  %v7381_v11 = vsub.f32 %v297_v4, %v7372_v22  ;;  %v500_v20 = vand.u32 4294901760, %v499_v30 }
  0x87   : > { %5931 = vmatmul.mubr.f32.gmra.mrb[8].mxu0 %v460_v38  ;;  %v509_v6 = vsub.f32 %v7365_v59, %v508_v21 }
  0x88   : > { %5933 = vmatprep.mubr.f32.mxu0 %v470_v52  ;;  %v518_v13 = vand.u32 4294901760, %v7381_v11 }
  0x89   : > { %v510_v2 = vand.u32 4294901760, %v509_v6 }
  0x8a   : > { %v519_v7 = vsub.f32 %v7381_v11, %v518_v13 }
  0x8b   : > { %5934 = vmatmul.mubr.f32.gmra.mrb[10].mxu0 %v480_v29 }
  0x8c   : > { %5936 = vmatprep.mubr.f32.mxu0 %v490_v1  ;;  %v520_v38 = vand.u32 4294901760, %v519_v7 }
  0x8f   : > { %5937 = vmatmul.mubr.f32.gmra.mrb[12].mxu0 %v500_v20 }
  0x90   : > { %5939 = vmatprep.mubr.f32.mxu0 %v510_v2 }
  0x93   : > { %5940 = vmatmul.mubr.f32.gmra.mrb[14].mxu0 %v520_v38 }
  0x94   : > { %5946 = vmatprep.mubr.f32.mxu0 %v7194_v10 }
  0x97   : > { %5947 = vmatmul.mubr.f32.vlgmr.msra.gmra.mrb[0].mxu0 %v7201_v16 }
  0x98   : > { %5949 = vmatprep.mubr.f32.mxu0 %v7203_v17  ;;  %6429 = vmatpush3.bf16.msra.mxu0 %v7279_v12 }
  0x99   : > { %6431 = vmatprep.subr.bf16.mxu0 %v7199_v15 }
  0x9b   : > { %5950 = vmatmul.mubr.f32.gmra.mrb[2].mxu0 %v7220_v26 }
  0x9c   : > { %5952 = vmatprep.mubr.f32.mxu0 %v7227_v31 }
  0x9f   : > { %5953 = vmatmul.mubr.f32.gmra.mrb[4].mxu0 %v7254_v43 }
  0xa0   : > { %5955 = vmatprep.mubr.f32.mxu0 %v7281_v9 }
  0xa3   : > { %5956 = vmatmul.mubr.f32.gmra.mrb[6].mxu0 %v7294_v36 }
  0xa4   : > { %5958 = vmatprep.mubr.f32.mxu0 %v7299_v44 }
  0xa7   : > { %5959 = vmatmul.mubr.f32.gmra.mrb[8].mxu0 %v7301_v45 }
  0xa8   : > { %5961 = vmatprep.mubr.f32.mxu0 %v7319_v56 }
  0xab   : > { %5962 = vmatmul.mubr.f32.gmra.mrb[10].mxu0 %v7334_v3 }
  0xac   : > { %5964 = vmatprep.mubr.f32.mxu0 %v7284_v27 }
  0xaf   : > { %5965 = vmatmul.mubr.f32.gmra.mrb[12].mxu0 %v7292_v35 }
  0xb0   : > { %5967 = vmatprep.mubr.f32.mxu0 %v7352_v37 }
  0xb3   : > { %5968 = vmatmul.mubr.f32.gmra.mrb[14].mxu0 %v7372_v22 }
  0xb4   : > { %5974 = vmatprep.mubr.f32.mxu0 %v7206_v19 }
  0xb7   : > { %5975 = vmatmul.mubr.f32.vlgmr.msra.gmra.mrb[0].mxu0 %v7215_v24 }
  0xb8   : > { %5977 = vmatprep.mubr.f32.mxu0 %v7218_v25  ;;  %6433 = vmatpush3.bf16.msra.mxu0 %v7199_v15 }
  0xb9   : > { %6435 = vmatprep.subr.bf16.mxu0 %v7359_v49 }
  0xbb   : > { %5978 = vmatmul.mubr.f32.gmra.mrb[2].mxu0 %v7232_v34 }
  0xbc   : > { %5980 = vmatprep.mubr.f32.mxu0 %v7245_v39 }
  0xbf   : > { %5981 = vmatmul.mubr.f32.gmra.mrb[4].mxu0 %v7261_v51 }
  0xc0   : > { %5983 = vmatprep.mubr.f32.mxu0 %v7289_v14 }
  0xc3   : > { %5984 = vmatmul.mubr.f32.gmra.mrb[6].mxu0 %v7304_v48 }
  0xc4   : > { %5986 = vmatprep.mubr.f32.mxu0 %v7314_v54 }
  0xc7   : > { %5987 = vmatmul.mubr.f32.gmra.mrb[8].mxu0 %v7317_v55 }
  0xc8   : > { %5989 = vmatprep.mubr.f32.mxu0 %v7329_v0 }
  0xcb   : > { %5990 = vmatmul.mubr.f32.gmra.mrb[10].mxu0 %v7346_v18 }
  0xcc   : > { %5992 = vmatprep.mubr.f32.mxu0 %v7308_v50 }
  0xcf   : > { %5993 = vmatmul.mubr.f32.gmra.mrb[12].mxu0 %v7324_v60 }
  0xd0   : > { %5995 = vmatprep.mubr.f32.mxu0 %v7365_v59 }
  0xd3   : > { %5996 = vmatmul.mubr.f32.gmra.mrb[14].mxu0 %v7381_v11 }
  0xd4   : > { %6002 = vmatprep.mubr.f32.mxu0 %v368_v28 }
  0xd7   : > { %6003 = vmatmul.mubr.f32.vlgmr.msra.gmra.mrb[0].mxu0 %v378_v32 }
  0xd8   : > { %6005 = vmatprep.mubr.f32.mxu0 %v388_v33  ;;  %6437 = vmatpush3.bf16.msra.mxu0 %v7359_v49 }
  0xd9   : > { %6439 = vmatprep.subr.bf16.mxu0 %v7199_v15 }
  0xdb   : > { %6006 = vmatmul.mubr.f32.gmra.mrb[2].mxu0 %v398_v42 }
  0xdc   : > { %6008 = vmatprep.mubr.f32.mxu0 %v408_v47 }
  0xdf   : > { %6009 = vmatmul.mubr.f32.gmra.mrb[4].mxu0 %v418_v57 }
  0xe0   : > { %6011 = vmatprep.mubr.f32.mxu0 %v428_v41 }
  0xe3   : > { %6012 = vmatmul.mubr.f32.gmra.mrb[6].mxu0 %v438_v58 }
  0xe4   : > { %6014 = vmatprep.mubr.f32.mxu0 %v448_v62 }
  0xe7   : > { %6015 = vmatmul.mubr.f32.gmra.mrb[8].mxu0 %v458_v63 }
  0xe8   : > { %6017 = vmatprep.mubr.f32.mxu0 %v468_v8 }
  0xeb   : > { %6018 = vmatmul.mubr.f32.gmra.mrb[10].mxu0 %v478_v40 }
  0xec   : > { %6020 = vmatprep.mubr.f32.mxu0 %v488_v5 }
  0xef   : > { %6021 = vmatmul.mubr.f32.gmra.mrb[12].mxu0 %v498_v23 }
  0xf0   : > { %6023 = vmatprep.mubr.f32.mxu0 %v508_v21 }
  0xf3   : > { %6024 = vmatmul.mubr.f32.gmra.mrb[14].mxu0 %v518_v13 }
  0xf4   : > { %6030 = vmatprep.mubr.f32.mxu0 %v7194_v10 }
  0xf7   : > { %6031 = vmatmul.mubr.f32.vlgmr.msra.gmra.mrb[0].mxu0 %v7201_v16 }
  0xf8   : > { %6033 = vmatprep.mubr.f32.mxu0 %v7203_v17  ;;  %6441 = vmatpush3.bf16.msra.mxu0 %v7199_v15 }
  0xfb   : > { %6034 = vmatmul.mubr.f32.gmra.mrb[2].mxu0 %v7220_v26 }
  0xfc   : > { %6036 = vmatprep.mubr.f32.mxu0 %v7227_v31 }
  0xff   : > { %6037 = vmatmul.mubr.f32.gmra.mrb[4].mxu0 %v7254_v43 }
 0x100   : > { %6039 = vmatprep.mubr.f32.mxu0 %v7281_v9 }
 0x103   : > { %6040 = vmatmul.mubr.f32.gmra.mrb[6].mxu0 %v7294_v36 }
 0x104   : > { %6042 = vmatprep.mubr.f32.mxu0 %v7299_v44 }
 0x107   : > { %6043 = vmatmul.mubr.f32.gmra.mrb[8].mxu0 %v7301_v45 }
 0x108   : > { %6045 = vmatprep.mubr.f32.mxu0 %v7319_v56 }
 0x10b   : > { %6046 = vmatmul.mubr.f32.gmra.mrb[10].mxu0 %v7334_v3 }
 0x10c   : > { %6048 = vmatprep.mubr.f32.mxu0 %v7284_v27 }
 0x10f   : > { %6049 = vmatmul.mubr.f32.gmra.mrb[12].mxu0 %v7292_v35 }
 0x110   : > { %6051 = vmatprep.mubr.f32.mxu0 %v7352_v37 }
 0x113   : > { %6052 = vmatmul.mubr.f32.gmra.mrb[14].mxu0 %v7372_v22 }
 0x114   : > { %6058 = vmatprep.mubr.f32.mxu0 %v7194_v10  ;;  %v248_v10 = vld [vmem:[#allocation4] sm:$0xff] }
 0x115   : > { %v1404_v15 = vsel %vm250_vm0, %v248_v10, 0 }
 0x117   : > { %6059 = vmatmul.mubr.f32.vlgmr.msra.gmra.mrb[0].mxu0 %v7201_v16  ;;  %v7487_v16 = vand.u32 4294901760, %v1404_v15 }
 0x118   : > { %6061 = vmatprep.mubr.f32.mxu0 %v7203_v17 }
 0x119   : > { %v7490_v17 = vsub.f32 %v1404_v15, %v7487_v16 }
 0x11b   : > { %6062 = vmatmul.mubr.f32.gmra.mrb[2].mxu0 %v7220_v26  ;;  %v7493_v19 = vand.u32 4294901760, %v7490_v17  ;;  %v249_v26 = vld [vmem:[#allocation4 + $0x8] sm:$0xff] }
 0x11c   : > { %6064 = vmatprep.mubr.f32.mxu0 %v7227_v31  ;;  %v1407_v28 = vsel %vm250_vm0, %v249_v26, 0 }
 0x11d   : > { %v1479_v24 = vsub.f32 %v7490_v17, %v7493_v19  ;;  %v7501_v31 = vand.u32 4294901760, %v1407_v28 }
 0x11f   : > { %6065 = vmatmul.mubr.f32.gmra.mrb[4].mxu0 %v7254_v43  ;;  %v7497_v25 = vand.u32 4294901760, %v1479_v24  ;;  %v7504_v32 = vsub.f32 %v1407_v28, %v7501_v31 }
 0x120   : > { %6067 = vmatprep.mubr.f32.mxu0 %v7281_v9 }
 0x121   : > { %6086 = vmatprep.mubr.f32.mxu1 %v7497_v25  ;;  %v7507_v33 = vand.u32 4294901760, %v7504_v32 }
 0x123   : > { %6068 = vmatmul.mubr.f32.gmra.mrb[6].mxu0 %v7294_v36  ;;  %v1489_v47 = vsub.f32 %v7504_v32, %v7507_v33 }
 0x124   : > { %6070 = vmatprep.mubr.f32.mxu0 %v7299_v44 }
 0x125   : > { %v7514_v44 = vand.u32 4294901760, %v1489_v47 }
 0x127   : > { %6071 = vmatmul.mubr.f32.gmra.mrb[8].mxu0 %v7301_v45 }
 0x128   : > { %6073 = vmatprep.mubr.f32.mxu0 %v7319_v56 }
 0x12b   : > { %6074 = vmatmul.mubr.f32.gmra.mrb[10].mxu0 %v7334_v3 }
 0x12c   : > { %6076 = vmatprep.mubr.f32.mxu0 %v7284_v27 }
 0x12f   : > { %6077 = vmatmul.mubr.f32.gmra.mrb[12].mxu0 %v7292_v35 }
 0x130   : > { %6079 = vmatprep.mubr.f32.mxu0 %v7352_v37 }
 0x133   : > { %6080 = vmatmul.mubr.f32.gmra.mrb[14].mxu0 %v7372_v22 }
 0x1ea   : > { %v6060_v34 = vpop.f32.mrb[0].mxu0 }
 0x1eb   : > { %v1413_v39 = vand.u32 4294901760, %v6060_v34  ;;  %v1309_v42 = vpop.f32.mrb[1].mxu0 }
 0x1ec   : > { %v1410_v43 = vand.u32 4294901760, %v1309_v42 }
 0x1ed   : > { %v1505_v51 = vsub.f32 %v6060_v34, %v1413_v39 }
 0x1ee   : > { %v7511_v57 = vpack.c.bf16 %v1413_v39, %v1410_v43  ;;  %v1498_v12 = vsub.f32 %v1309_v42, %v1410_v43  ;;  %v6063_v9 = vpop.f32.mrb[2].mxu0 }
 0x1ef   : > { %v1506_v27 = vand.u32 4294901760, %v1505_v51  ;;  %v1915_v14 = vand.u32 4294901760, %v6063_v9  ;;  %v1321_v35 = vpop.f32.mrb[3].mxu0 }
 0x1f0   : > { %v1499_v36 = vand.u32 4294901760, %v1498_v12  ;;  %v1912_v41 = vand.u32 4294901760, %v1321_v35  ;;  %6443 = vmatprep.subr.bf16.mxu1 %v7511_v57  ;;  %v6450_v45 = vpack.c.bf16 %v1505_v51, %v1498_v12 }
 0x1f1   : > { %v1507_v48 = vsub.f32 %v1505_v51, %v1506_v27  ;;  %v2007_v50 = vsub.f32 %v6063_v9, %v1915_v14  ;;  %6445 = vmatpush3.bf16.msra.mxu1 %v7511_v57 }
 0x1f2   : > { %v1500_v54 = vsub.f32 %v1498_v12, %v1499_v36  ;;  %v7517_v55 = vpack.c.bf16 %v1915_v14, %v1912_v41  ;;  %v2000_v56 = vsub.f32 %v1321_v35, %v1912_v41  ;;  %v6066_v58 = vpop.f32.mrb[4].mxu0  ;;  %v7519_v60 = vpack.c.bf16 %v1506_v27, %v1499_v36 }
 0x1f3   : > { %v2008_v62 = vand.u32 4294901760, %v2007_v50  ;;  %v2417_v63 = vand.u32 4294901760, %v6066_v58  ;;  %v1333_v0 = vpop.f32.mrb[5].mxu0  ;;  %v1508_v3 = vand.u32 4294901760, %v1507_v48 }
 0x1f4   : > { %v2001_v5 = vand.u32 4294901760, %v2000_v56  ;;  %v2414_v8 = vand.u32 4294901760, %v1333_v0  ;;  %6087 = vmatmul.mubr.f32.vlgmr.msra.gmra.mrb[0].mxu1 %v7514_v44  ;;  %v1501_v18 = vand.u32 4294901760, %v1500_v54  ;;  %v7522_v23 = vpack.c.bf16 %v2007_v50, %v2000_v56 }
 0x1f5   : > { %v2009_v37 = vsub.f32 %v2007_v50, %v2008_v62  ;;  %v2509_v40 = vsub.f32 %v6066_v58, %v2417_v63  ;;  %6093 = vmatprep.mubr.f32.mxu1 %v7487_v16 }
 0x1f6   : > { %v2002_v46 = vsub.f32 %v2000_v56, %v2001_v5  ;;  %v7525_v49 = vpack.c.bf16 %v2417_v63, %v2414_v8  ;;  %v2502_v52 = vsub.f32 %v1333_v0, %v2414_v8  ;;  %v6069_v53 = vpop.f32.mrb[6].mxu0  ;;  %v6446_v59 = vpack.c.bf16 %v1508_v3, %v1501_v18 }
 0x1f7   : > { %v2510_v61 = vand.u32 4294901760, %v2509_v40  ;;  %v2919_v4 = vand.u32 4294901760, %v6069_v53  ;;  %v1345_v21 = vpop.f32.mrb[7].mxu0  ;;  %v2010_v22 = vand.u32 4294901760, %v2009_v37  ;;  %v7527_v29 = vpack.c.bf16 %v2008_v62, %v2001_v5 }
 0x1f8   : > { %v2503_v30 = vand.u32 4294901760, %v2502_v52  ;;  %v2916_v1 = vand.u32 4294901760, %v1345_v21  ;;  %6447 = vmatprep.subr.bf16.mxu1 %v6446_v59  ;;  %v2003_v6 = vand.u32 4294901760, %v2002_v46  ;;  %v7529_v11 = vpack.c.bf16 %v2509_v40, %v2502_v52 }
 0x1f9   : > { %v2511_v13 = vsub.f32 %v2509_v40, %v2510_v61  ;;  %v3011_v20 = vsub.f32 %v6069_v53, %v2919_v4  ;;  %6449 = vmatpush3.bf16.msra.mxu1 %v6446_v59 }
 0x1fa   : > { %v2504_v2 = vsub.f32 %v2502_v52, %v2503_v30  ;;  %v7531_v7 = vpack.c.bf16 %v2919_v4, %v2916_v1  ;;  %v3004_v38 = vsub.f32 %v1345_v21, %v2916_v1  ;;  %v6072_v10 = vpop.f32.mrb[8].mxu0  ;;  %6451 = vmatprep.subr.bf16.mxu1 %v6450_v45  ;;  %v7533_v15 = vpack.c.bf16 %v2010_v22, %v2003_v6 }
 0x1fb   : > { %v3012_v24 = vand.u32 4294901760, %v3011_v20  ;;  %v3421_v26 = vand.u32 4294901760, %v6072_v10  ;;  %v1357_v28 = vpop.f32.mrb[9].mxu0  ;;  %v2512_v34 = vand.u32 4294901760, %v2511_v13  ;;  %v7535_v39 = vpack.c.bf16 %v2510_v61, %v2503_v30 }
 0x1fc   : > { %v3005_v42 = vand.u32 4294901760, %v3004_v38  ;;  %v3418_v43 = vand.u32 4294901760, %v1357_v28  ;;  %6094 = vmatmul.mubr.f32.vlgmr.msra.gmra.mrb[0].mxu1 %v7501_v31  ;;  %v2505_v47 = vand.u32 4294901760, %v2504_v2  ;;  %v7538_v51 = vpack.c.bf16 %v3011_v20, %v3004_v38 }
 0x1fd   : > { %v3013_v12 = vsub.f32 %v3011_v20, %v3012_v24  ;;  %v3513_v9 = vsub.f32 %v6072_v10, %v3421_v26  ;;  %6453 = vmatpush3.bf16.msra.mxu1 %v6450_v45  ;;  %6100 = vmatprep.mubr.f32.mxu1 %v7490_v17 }
 0x1fe   : > { %v3006_v27 = vsub.f32 %v3004_v38, %v3005_v42  ;;  %v7541_v14 = vpack.c.bf16 %v3421_v26, %v3418_v43  ;;  %v3506_v35 = vsub.f32 %v1357_v28, %v3418_v43  ;;  %v6075_v36 = vpop.f32.mrb[10].mxu0  ;;  %6455 = vmatprep.subr.bf16.mxu1 %v7511_v57  ;;  %v7544_v41 = vpack.c.bf16 %v2512_v34, %v2505_v47 }
 0x1ff   : > { %v3514_v48 = vand.u32 4294901760, %v3513_v9  ;;  %v3923_v50 = vand.u32 4294901760, %v6075_v36  ;;  %v1369_v54 = vpop.f32.mrb[11].mxu0  ;;  %v3014_v56 = vand.u32 4294901760, %v3013_v12  ;;  %v7546_v58 = vpack.c.bf16 %v3012_v24, %v3005_v42 }
 0x200   : > { %v3507_v62 = vand.u32 4294901760, %v3506_v35  ;;  %v3920_v63 = vand.u32 4294901760, %v1369_v54  ;;  %v3007_v45 = vand.u32 4294901760, %v3006_v27  ;;  %v7548_v0 = vpack.c.bf16 %v3513_v9, %v3506_v35 }
 0x201   : > { %v3515_v3 = vsub.f32 %v3513_v9, %v3514_v48  ;;  %v4015_v5 = vsub.f32 %v6075_v36, %v3923_v50 }
 0x202   : > { %v3508_v8 = vsub.f32 %v3506_v35, %v3507_v62  ;;  %v7550_v18 = vpack.c.bf16 %v3923_v50, %v3920_v63  ;;  %v4008_v37 = vsub.f32 %v1369_v54, %v3920_v63  ;;  %v6078_v40 = vpop.f32.mrb[12].mxu0  ;;  %v7552_v46 = vpack.c.bf16 %v3014_v56, %v3007_v45 }
 0x203   : > { %v4016_v52 = vand.u32 4294901760, %v4015_v5  ;;  %v4425_v53 = vand.u32 4294901760, %v6078_v40  ;;  %v1381_v59 = vpop.f32.mrb[13].mxu0  ;;  %v3516_v61 = vand.u32 4294901760, %v3515_v3  ;;  %v7554_v4 = vpack.c.bf16 %v3514_v48, %v3507_v62 }
 0x204   : > { %v4009_v21 = vand.u32 4294901760, %v4008_v37  ;;  %v4422_v22 = vand.u32 4294901760, %v1381_v59  ;;  %6101 = vmatmul.mubr.f32.vlgmr.msra.gmra.mrb[0].mxu1 %v7504_v32  ;;  %v3509_v30 = vand.u32 4294901760, %v3508_v8  ;;  %v7557_v1 = vpack.c.bf16 %v4015_v5, %v4008_v37 }
 0x205   : > { %v4017_v6 = vsub.f32 %v4015_v5, %v4016_v52  ;;  %v4517_v13 = vsub.f32 %v6078_v40, %v4425_v53  ;;  %6457 = vmatpush3.bf16.msra.mxu1 %v7511_v57  ;;  %6107 = vmatprep.mubr.f32.mxu1 %v7493_v19 }
 0x206   : > { %v4010_v20 = vsub.f32 %v4008_v37, %v4009_v21  ;;  %v7561_v2 = vpack.c.bf16 %v4425_v53, %v4422_v22  ;;  %v4510_v38 = vsub.f32 %v1381_v59, %v4422_v22  ;;  %6459 = vmatprep.subr.bf16.mxu1 %v7519_v60  ;;  %v6081_v10 = vpop.f32.mrb[14].mxu0  ;;  %v7564_v24 = vpack.c.bf16 %v3516_v61, %v3509_v30 }
 0x207   : > { %v4518_v26 = vand.u32 4294901760, %v4517_v13  ;;  %v4927_v28 = vand.u32 4294901760, %v6081_v10  ;;  %v1393_v34 = vpop.f32.mrb[15].mxu0  ;;  %v4018_v42 = vand.u32 4294901760, %v4017_v6  ;;  %v7566_v43 = vpack.c.bf16 %v4016_v52, %v4009_v21 }
 0x208   : > { %v4511_v47 = vand.u32 4294901760, %v4510_v38  ;;  %v4924_v12 = vand.u32 4294901760, %v1393_v34  ;;  %v4011_v9 = vand.u32 4294901760, %v4010_v20  ;;  %v7568_v27 = vpack.c.bf16 %v4517_v13, %v4510_v38 }
 0x209   : > { %v4519_v35 = vsub.f32 %v4517_v13, %v4518_v26  ;;  %v5019_v36 = vsub.f32 %v6081_v10, %v4927_v28 }
 0x20a   : > { %v4512_v48 = vsub.f32 %v4510_v38, %v4511_v47  ;;  %v7570_v50 = vpack.c.bf16 %v4927_v28, %v4924_v12  ;;  %v5012_v54 = vsub.f32 %v1393_v34, %v4924_v12  ;;  %v7572_v56 = vpack.c.bf16 %v4018_v42, %v4011_v9 }
 0x20b   : > { %v5020_v62 = vand.u32 4294901760, %v5019_v36  ;;  %v4520_v63 = vand.u32 4294901760, %v4519_v35  ;;  %v7574_v45 = vpack.c.bf16 %v4518_v26, %v4511_v47 }
 0x20c   : > { %v5013_v3 = vand.u32 4294901760, %v5012_v54  ;;  %6108 = vmatmul.mubr.f32.vlgmr.msra.gmra.mrb[0].mxu1 %v7507_v33  ;;  %v4513_v5 = vand.u32 4294901760, %v4512_v48  ;;  %v7577_v8 = vpack.c.bf16 %v5019_v36, %v5012_v54 }
 0x20d   : > { %v5021_v37 = vsub.f32 %v5019_v36, %v5020_v62  ;;  %6461 = vmatpush3.bf16.msra.mxu1 %v7519_v60  ;;  %6114 = vmatprep.mubr.f32.mxu1 %v7487_v16 }
 0x20e   : > { %v5014_v40 = vsub.f32 %v5012_v54, %v5013_v3  ;;  %6463 = vmatprep.subr.bf16.mxu1 %v7511_v57  ;;  %v7582_v52 = vpack.c.bf16 %v4520_v63, %v4513_v5  ;;  %v7584_v53 = vpack.c.bf16 %v5020_v62, %v5013_v3 }
 0x20f   : > { %v5022_v59 = vand.u32 4294901760, %v5021_v37 }
 0x210   : > { %v5015_v61 = vand.u32 4294901760, %v5014_v40 }
 0x212   : > { %v7586_v21 = vpack.c.bf16 %v5022_v59, %v5015_v61 }
 0x214   : > { %6115 = vmatmul.mubr.f32.vlgmr.msra.gmra.mrb[0].mxu1 %v7501_v31 }
 0x215   : > { %6465 = vmatpush3.bf16.msra.mxu1 %v7511_v57  ;;  %6121 = vmatprep.mubr.f32.mxu1 %v7487_v16 }
 0x216   : > { %6467 = vmatprep.subr.bf16.mxu1 %v7517_v55 }
 0x21c   : > { %6122 = vmatmul.mubr.f32.vlgmr.msra.gmra.mrb[0].mxu1 %v7501_v31 }
 0x21d   : > { %6469 = vmatpush3.bf16.msra.mxu1 %v7517_v55  ;;  %6128 = vmatprep.mubr.f32.mxu1 %v7497_v25 }
 0x21e   : > { %6471 = vmatprep.subr.bf16.mxu1 %v7533_v15 }
 0x220   : > { %6129 = vmatmul.mubr.f32.vlgmr.msra.gmra.mrb[2].mxu1 %v7514_v44 }
 0x221   : > { %6473 = vmatpush3.bf16.msra.mxu1 %v7533_v15  ;;  %6135 = vmatprep.mubr.f32.mxu1 %v7487_v16 }
 0x222   : > { %6475 = vmatprep.subr.bf16.mxu1 %v7522_v23 }
 0x228   : > { %6136 = vmatmul.mubr.f32.vlgmr.msra.gmra.mrb[2].mxu1 %v7501_v31 }
 0x229   : > { %6477 = vmatpush3.bf16.msra.mxu1 %v7522_v23  ;;  %6142 = vmatprep.mubr.f32.mxu1 %v7490_v17 }
 0x22a   : > { %6479 = vmatprep.subr.bf16.mxu1 %v7517_v55 }
 0x230   : > { %6143 = vmatmul.mubr.f32.vlgmr.msra.gmra.mrb[2].mxu1 %v7504_v32 }
 0x231   : > { %6481 = vmatpush3.bf16.msra.mxu1 %v7517_v55  ;;  %6149 = vmatprep.mubr.f32.mxu1 %v7493_v19 }
 0x232   : > { %6483 = vmatprep.subr.bf16.mxu1 %v7527_v29 }
 0x238   : > { %6150 = vmatmul.mubr.f32.vlgmr.msra.gmra.mrb[2].mxu1 %v7507_v33 }
 0x239   : > { %6485 = vmatpush3.bf16.msra.mxu1 %v7527_v29  ;;  %6156 = vmatprep.mubr.f32.mxu1 %v7487_v16 }
 0x23a   : > { %6487 = vmatprep.subr.bf16.mxu1 %v7517_v55 }
 0x240   : > { %6157 = vmatmul.mubr.f32.vlgmr.msra.gmra.mrb[2].mxu1 %v7501_v31 }
 0x241   : > { %6489 = vmatpush3.bf16.msra.mxu1 %v7517_v55  ;;  %6163 = vmatprep.mubr.f32.mxu1 %v7487_v16 }
 0x242   : > { %6491 = vmatprep.subr.bf16.mxu1 %v7525_v49 }
 0x248   : > { %6164 = vmatmul.mubr.f32.vlgmr.msra.gmra.mrb[2].mxu1 %v7501_v31 }
 0x249   : > { %6493 = vmatpush3.bf16.msra.mxu1 %v7525_v49  ;;  %6170 = vmatprep.mubr.f32.mxu1 %v7497_v25 }
 0x24a   : > { %6495 = vmatprep.subr.bf16.mxu1 %v7544_v41 }
 0x24c   : > { %6171 = vmatmul.mubr.f32.vlgmr.msra.gmra.mrb[4].mxu1 %v7514_v44 }
 0x24d   : > { %6497 = vmatpush3.bf16.msra.mxu1 %v7544_v41  ;;  %6177 = vmatprep.mubr.f32.mxu1 %v7487_v16 }
 0x24e   : > { %6499 = vmatprep.subr.bf16.mxu1 %v7529_v11 }
 0x254   : > { %6178 = vmatmul.mubr.f32.vlgmr.msra.gmra.mrb[4].mxu1 %v7501_v31 }
 0x255   : > { %6501 = vmatpush3.bf16.msra.mxu1 %v7529_v11  ;;  %6184 = vmatprep.mubr.f32.mxu1 %v7490_v17 }
 0x256   : > { %6503 = vmatprep.subr.bf16.mxu1 %v7525_v49 }
 0x25c   : > { %6185 = vmatmul.mubr.f32.vlgmr.msra.gmra.mrb[4].mxu1 %v7504_v32 }
 0x25d   : > { %6505 = vmatpush3.bf16.msra.mxu1 %v7525_v49  ;;  %6191 = vmatprep.mubr.f32.mxu1 %v7493_v19 }
 0x25e   : > { %6507 = vmatprep.subr.bf16.mxu1 %v7535_v39 }
 0x264   : > { %6192 = vmatmul.mubr.f32.vlgmr.msra.gmra.mrb[4].mxu1 %v7507_v33 }
 0x265   : > { %6509 = vmatpush3.bf16.msra.mxu1 %v7535_v39  ;;  %6198 = vmatprep.mubr.f32.mxu1 %v7487_v16 }
 0x266   : > { %6511 = vmatprep.subr.bf16.mxu1 %v7525_v49 }
 0x26c   : > { %6199 = vmatmul.mubr.f32.vlgmr.msra.gmra.mrb[4].mxu1 %v7501_v31 }
 0x26d   : > { %6513 = vmatpush3.bf16.msra.mxu1 %v7525_v49  ;;  %6205 = vmatprep.mubr.f32.mxu1 %v7487_v16 }
 0x26e   : > { %6515 = vmatprep.subr.bf16.mxu1 %v7531_v7 }
 0x274   : > { %6206 = vmatmul.mubr.f32.vlgmr.msra.gmra.mrb[4].mxu1 %v7501_v31 }
 0x275   : > { %6517 = vmatpush3.bf16.msra.mxu1 %v7531_v7  ;;  %6212 = vmatprep.mubr.f32.mxu1 %v7497_v25 }
 0x276   : > { %6519 = vmatprep.subr.bf16.mxu1 %v7552_v46 }
 0x278   : > { %6213 = vmatmul.mubr.f32.vlgmr.msra.gmra.mrb[6].mxu1 %v7514_v44 }
 0x279   : > { %6521 = vmatpush3.bf16.msra.mxu1 %v7552_v46  ;;  %6219 = vmatprep.mubr.f32.mxu1 %v7487_v16 }
 0x27a   : > { %6523 = vmatprep.subr.bf16.mxu1 %v7538_v51 }
 0x280   : > { %6220 = vmatmul.mubr.f32.vlgmr.msra.gmra.mrb[6].mxu1 %v7501_v31 }
 0x281   : > { %6525 = vmatpush3.bf16.msra.mxu1 %v7538_v51  ;;  %6226 = vmatprep.mubr.f32.mxu1 %v7490_v17 }
 0x282   : > { %6527 = vmatprep.subr.bf16.mxu1 %v7531_v7 }
 0x288   : > { %6227 = vmatmul.mubr.f32.vlgmr.msra.gmra.mrb[6].mxu1 %v7504_v32 }
 0x289   : > { %6529 = vmatpush3.bf16.msra.mxu1 %v7531_v7  ;;  %6233 = vmatprep.mubr.f32.mxu1 %v7493_v19 }
 0x28a   : > { %6531 = vmatprep.subr.bf16.mxu1 %v7546_v58 }
 0x290   : > { %6234 = vmatmul.mubr.f32.vlgmr.msra.gmra.mrb[6].mxu1 %v7507_v33 }
 0x291   : > { %6533 = vmatpush3.bf16.msra.mxu1 %v7546_v58  ;;  %6240 = vmatprep.mubr.f32.mxu1 %v7487_v16 }
 0x292   : > { %6535 = vmatprep.subr.bf16.mxu1 %v7531_v7 }
 0x298   : > { %6241 = vmatmul.mubr.f32.vlgmr.msra.gmra.mrb[6].mxu1 %v7501_v31 }
 0x299   : > { %6537 = vmatpush3.bf16.msra.mxu1 %v7531_v7  ;;  %6247 = vmatprep.mubr.f32.mxu1 %v7487_v16 }
 0x29a   : > { %6539 = vmatprep.subr.bf16.mxu1 %v7541_v14 }
 0x2a0   : > { %6248 = vmatmul.mubr.f32.vlgmr.msra.gmra.mrb[6].mxu1 %v7501_v31 }
 0x2a1   : > { %6541 = vmatpush3.bf16.msra.mxu1 %v7541_v14  ;;  %6254 = vmatprep.mubr.f32.mxu1 %v7497_v25 }
 0x2a2   : > { %6543 = vmatprep.subr.bf16.mxu1 %v7564_v24 }
 0x2a4   : > { %6255 = vmatmul.mubr.f32.vlgmr.msra.gmra.mrb[8].mxu1 %v7514_v44 }
 0x2a5   : > { %6545 = vmatpush3.bf16.msra.mxu1 %v7564_v24  ;;  %6261 = vmatprep.mubr.f32.mxu1 %v7487_v16 }
 0x2a6   : > { %6547 = vmatprep.subr.bf16.mxu1 %v7548_v0 }
 0x2ac   : > { %6262 = vmatmul.mubr.f32.vlgmr.msra.gmra.mrb[8].mxu1 %v7501_v31 }
 0x2ad   : > { %6549 = vmatpush3.bf16.msra.mxu1 %v7548_v0  ;;  %6268 = vmatprep.mubr.f32.mxu1 %v7490_v17 }
 0x2ae   : > { %6551 = vmatprep.subr.bf16.mxu1 %v7541_v14 }
 0x2b4   : > { %6269 = vmatmul.mubr.f32.vlgmr.msra.gmra.mrb[8].mxu1 %v7504_v32 }
 0x2b5   : > { %6553 = vmatpush3.bf16.msra.mxu1 %v7541_v14  ;;  %6275 = vmatprep.mubr.f32.mxu1 %v7493_v19 }
 0x2b6   : > { %6555 = vmatprep.subr.bf16.mxu1 %v7554_v4 }
 0x2bc   : > { %6276 = vmatmul.mubr.f32.vlgmr.msra.gmra.mrb[8].mxu1 %v7507_v33 }
 0x2bd   : > { %6557 = vmatpush3.bf16.msra.mxu1 %v7554_v4  ;;  %6282 = vmatprep.mubr.f32.mxu1 %v7487_v16 }
 0x2be   : > { %6559 = vmatprep.subr.bf16.mxu1 %v7541_v14 }
 0x2c4   : > { %6283 = vmatmul.mubr.f32.vlgmr.msra.gmra.mrb[8].mxu1 %v7501_v31 }
 0x2c5   : > { %6561 = vmatpush3.bf16.msra.mxu1 %v7541_v14  ;;  %6289 = vmatprep.mubr.f32.mxu1 %v7487_v16 }
 0x2c6   : > { %6563 = vmatprep.subr.bf16.mxu1 %v7550_v18 }
 0x2cc   : > { %6290 = vmatmul.mubr.f32.vlgmr.msra.gmra.mrb[8].mxu1 %v7501_v31 }
 0x2cd   : > { %6565 = vmatpush3.bf16.msra.mxu1 %v7550_v18  ;;  %6296 = vmatprep.mubr.f32.mxu1 %v7497_v25 }
 0x2ce   : > { %6567 = vmatprep.subr.bf16.mxu1 %v7572_v56 }
 0x2d0   : > { %6297 = vmatmul.mubr.f32.vlgmr.msra.gmra.mrb[10].mxu1 %v7514_v44 }
 0x2d1   : > { %6569 = vmatpush3.bf16.msra.mxu1 %v7572_v56  ;;  %6303 = vmatprep.mubr.f32.mxu1 %v7487_v16 }
 0x2d2   : > { %6571 = vmatprep.subr.bf16.mxu1 %v7557_v1 }
 0x2d8   : > { %6304 = vmatmul.mubr.f32.vlgmr.msra.gmra.mrb[10].mxu1 %v7501_v31 }
 0x2d9   : > { %6573 = vmatpush3.bf16.msra.mxu1 %v7557_v1  ;;  %6310 = vmatprep.mubr.f32.mxu1 %v7490_v17 }
 0x2da   : > { %6575 = vmatprep.subr.bf16.mxu1 %v7550_v18 }
 0x2e0   : > { %6311 = vmatmul.mubr.f32.vlgmr.msra.gmra.mrb[10].mxu1 %v7504_v32 }
 0x2e1   : > { %6577 = vmatpush3.bf16.msra.mxu1 %v7550_v18  ;;  %6317 = vmatprep.mubr.f32.mxu1 %v7493_v19 }
 0x2e2   : > { %6579 = vmatprep.subr.bf16.mxu1 %v7566_v43 }
 0x2e8   : > { %6318 = vmatmul.mubr.f32.vlgmr.msra.gmra.mrb[10].mxu1 %v7507_v33 }
 0x2e9   : > { %6581 = vmatpush3.bf16.msra.mxu1 %v7566_v43  ;;  %6324 = vmatprep.mubr.f32.mxu1 %v7487_v16 }
 0x2ea   : > { %6583 = vmatprep.subr.bf16.mxu1 %v7550_v18 }
 0x2ef   : > { %v6123_v57 = vpop.f32.mrb[0].mxu1 }
 0x2f0   : > { %v1901_v55 = vpop.f32.mrb[1].mxu1  ;;  %6325 = vmatmul.mubr.f32.vlgmr.msra.gmra.mrb[10].mxu1 %v7501_v31 }
 0x2f1   : > { %6585 = vmatpush3.bf16.msra.mxu1 %v7550_v18  ;;  %6331 = vmatprep.mubr.f32.mxu1 %v7487_v16 }
 0x2f2   : > { %6587 = vmatprep.subr.bf16.mxu1 %v7561_v2 }
 0x2f8   : > { %6332 = vmatmul.mubr.f32.vlgmr.msra.gmra.mrb[10].mxu1 %v7501_v31 }
 0x2f9   : > { %6589 = vmatpush3.bf16.msra.mxu1 %v7561_v2  ;;  %6338 = vmatprep.mubr.f32.mxu1 %v7497_v25 }
 0x2fa   : > { %6591 = vmatprep.subr.bf16.mxu1 %v7582_v52 }
 0x2fc   : > { %6339 = vmatmul.mubr.f32.vlgmr.msra.gmra.mrb[12].mxu1 %v7514_v44 }
 0x2fd   : > { %6593 = vmatpush3.bf16.msra.mxu1 %v7582_v52  ;;  %6345 = vmatprep.mubr.f32.mxu1 %v7487_v16 }
 0x2fe   : > { %6595 = vmatprep.subr.bf16.mxu1 %v7568_v27 }
 0x304   : > { %6346 = vmatmul.mubr.f32.vlgmr.msra.gmra.mrb[12].mxu1 %v7501_v31 }
 0x305   : > { %6597 = vmatpush3.bf16.msra.mxu1 %v7568_v27  ;;  %6352 = vmatprep.mubr.f32.mxu1 %v7490_v17 }
 0x306   : > { %6599 = vmatprep.subr.bf16.mxu1 %v7561_v2 }
 0x30c   : > { %6353 = vmatmul.mubr.f32.vlgmr.msra.gmra.mrb[12].mxu1 %v7504_v32 }
 0x30d   : > { %6601 = vmatpush3.bf16.msra.mxu1 %v7561_v2  ;;  %6359 = vmatprep.mubr.f32.mxu1 %v7493_v19 }
 0x30e   : > { %6603 = vmatprep.subr.bf16.mxu1 %v7574_v45 }
 0x314   : > { %6360 = vmatmul.mubr.f32.vlgmr.msra.gmra.mrb[12].mxu1 %v7507_v33 }
 0x315   : > { %6605 = vmatpush3.bf16.msra.mxu1 %v7574_v45  ;;  %6366 = vmatprep.mubr.f32.mxu1 %v7487_v16 }
 0x316   : > { %6607 = vmatprep.subr.bf16.mxu1 %v7561_v2 }
 0x31b   : > { %v6165_v60 = vpop.f32.mrb[2].mxu1 }
 0x31c   : > { %v2403_v23 = vpop.f32.mrb[3].mxu1  ;;  %6367 = vmatmul.mubr.f32.vlgmr.msra.gmra.mrb[12].mxu1 %v7501_v31 }
 0x31d   : > { %6609 = vmatpush3.bf16.msra.mxu1 %v7561_v2  ;;  %6373 = vmatprep.mubr.f32.mxu1 %v7487_v16  ;;  %v5429_v11 = vmul.f32 %v2403_v23, %v2403_v23 }
 0x31e   : > { %6611 = vmatprep.subr.bf16.mxu1 %v7570_v50 }
 0x324   : > { %6374 = vmatmul.mubr.f32.vlgmr.msra.gmra.mrb[12].mxu1 %v7501_v31 }
 0x325   : > { %6613 = vmatpush3.bf16.msra.mxu1 %v7570_v50  ;;  %6380 = vmatprep.mubr.f32.mxu1 %v7497_v25 }
 0x326   : > { %6615 = vmatprep.subr.bf16.mxu1 %v7586_v21 }
 0x328   : > { %6381 = vmatmul.mubr.f32.vlgmr.msra.gmra.mrb[14].mxu1 %v7514_v44 }
 0x329   : > { %6617 = vmatpush3.bf16.msra.mxu1 %v7586_v21  ;;  %6387 = vmatprep.mubr.f32.mxu1 %v7487_v16 }
 0x32a   : > { %6619 = vmatprep.subr.bf16.mxu1 %v7577_v8 }
 0x330   : > { %6388 = vmatmul.mubr.f32.vlgmr.msra.gmra.mrb[14].mxu1 %v7501_v31 }
 0x331   : > { %6621 = vmatpush3.bf16.msra.mxu1 %v7577_v8  ;;  %6394 = vmatprep.mubr.f32.mxu1 %v7490_v17 }
 0x332   : > { %6623 = vmatprep.subr.bf16.mxu1 %v7570_v50 }
 0x338   : > { %6395 = vmatmul.mubr.f32.vlgmr.msra.gmra.mrb[14].mxu1 %v7504_v32  ;;  %v5425_v32 = vmul.f32 %v1901_v55, %v1901_v55 }
 0x339   : > { %6625 = vmatpush3.bf16.msra.mxu1 %v7570_v50  ;;  %6401 = vmatprep.mubr.f32.mxu1 %v7493_v19  ;;  %v5426_v19 = vmul.f32 %v6123_v57, %v6123_v57 }
 0x33a   : > { %6627 = vmatprep.subr.bf16.mxu1 %v7584_v53 }
 0x340   : > { %6402 = vmatmul.mubr.f32.vlgmr.msra.gmra.mrb[14].mxu1 %v7507_v33  ;;  %v5430_v33 = vmul.f32 %v6165_v60, %v6165_v60 }
 0x341   : > { %6629 = vmatpush3.bf16.msra.mxu1 %v7584_v53  ;;  %6408 = vmatprep.mubr.f32.mxu1 %v7487_v16 }
 0x342   : > { %6631 = vmatprep.subr.bf16.mxu1 %v7570_v50 }
 0x347   : > { %v6207_v25 = vpop.f32.mrb[4].mxu1 }
 0x348   : > { %v2905_v17 = vpop.f32.mrb[5].mxu1  ;;  %6409 = vmatmul.mubr.f32.vlgmr.msra.gmra.mrb[14].mxu1 %v7501_v31  ;;  %v5434_v15 = vmul.f32 %v6207_v25, %v6207_v25 }
 0x349   : > { %6633 = vmatpush3.bf16.msra.mxu1 %v7570_v50  ;;  %6415 = vmatprep.mubr.f32.mxu1 %v7487_v16  ;;  %v5433_v51 = vmul.f32 %v2905_v17, %v2905_v17 }
 0x350   : > { %6416 = vmatmul.mubr.f32.vlgmr.msra.gmra.mrb[14].mxu1 %v7501_v31 }
 0x373   : > { %v6249_v44 = vpop.f32.mrb[6].mxu1 }
 0x374   : > { %v5428_v49 = vsub.f32 %v6249_v44, %v5426_v19  ;;  %v3407_v29 = vpop.f32.mrb[7].mxu1 }
 0x375   : > { %v5427_v7 = vsub.f32 %v3407_v29, %v5425_v32 }
 0x376   : > { %v5432_v39 = vsub.f32 %v5428_v49, %v5430_v33 }
 0x377   : > { %v5431_v14 = vsub.f32 %v5427_v7, %v5429_v11 }
 0x378   : > { %v5436_v41 = vsub.f32 %v5432_v39, %v5434_v15 }
 0x379   : > { %v5435_v58 = vsub.f32 %v5431_v14, %v5433_v51 }
 0x37a   : > { %v5438_v31 = vmul.f32 0.33333334, %v5436_v41 }
 0x37b   : > { %v5437_v1 = vmul.f32 0.33333334, %v5435_v58 }
 0x39f   : > { %v6291_v0 = vpop.f32.mrb[8].mxu1 }
 0x3a0   : > { %v3909_v18 = vpop.f32.mrb[9].mxu1  ;;  %v5440_v46 = vmul.f32 %v6291_v0, %v6291_v0 }
 0x3a1   : > { %v5439_v16 = vmul.f32 %v3909_v18, %v3909_v18 }
 0x3cb   : > { %v6333_v4 = vpop.f32.mrb[10].mxu1 }
 0x3cc   : > { %v5442_v22 = vsub.f32 %v6333_v4, %v5440_v46  ;;  %v4411_v30 = vpop.f32.mrb[11].mxu1 }
 0x3cd   : > { %v5441_v6 = vsub.f32 %v4411_v30, %v5439_v16 }
 0x3ce   : > { %v5487_v13 = vsub.f32 %v5438_v31, %v5442_v22 }
 0x3cf   : > { %v5486_v20 = vsub.f32 %v5437_v1, %v5441_v6 }
 0x3f7   : > { %v6375_v2 = vpop.f32.mrb[12].mxu1 }
 0x3f8   : > { %v4913_v38 = vpop.f32.mrb[13].mxu1  ;;  %v5444_v10 = vmul.f32 %v6375_v2, %v6375_v2 }
 0x3f9   : > { %v5443_v24 = vmul.f32 %v4913_v38, %v4913_v38 }
 0x423   : > { %v6417_v26 = vpop.f32.mrb[14].mxu1 }
 0x424   : > { %v5446_v28 = vsub.f32 %v6417_v26, %v5444_v10  ;;  %v5415_v34 = vpop.f32.mrb[15].mxu1 }
 0x425   : > { %v5445_v42 = vsub.f32 %v5415_v34, %v5443_v24 }
 0x426   : > { %v5448_v47 = vmul.f32 0.6666667, %v5446_v28 }
 0x427   : > { %v5447_v43 = vmul.f32 0.6666667, %v5445_v42 }
 0x428   : > { %v5452_v9 = vsel %vm250_vm0, %v5448_v47, 0.0  ;;  %v5464_v3 = vmul.f32 -128.0, %v5448_v47 }
 0x429   : > { %v5449_v12 = vsel %vm250_vm0, %v5447_v43, 0.0  ;;  %v5463_v5 = vmul.f32 -128.0, %v5447_v43 }
 0x42a   : > { %5450 = vadd.xlane.f32.xlu0 %v5449_v12 }
 0x42e   : > { %5453 = vadd.xlane.f32.xlu0 %v5452_v9 }
 0x4b7   : > { %v5451_v27 = vpop.xlane.xlu0 %5450 }
 0x4bb   : > { %v5454_v35 = vpop.xlane.xlu0 %5453 }
 0x4bc   : > { %v5455_v36 = vadd.f32 %v5454_v35, %v5451_v27 }
 0x4be   : > { %v5456_v48 = vrot.slane %v5455_v36, 4 }
 0x4c0   : > { %v5457_v50 = vadd.f32 %v5456_v48, %v5455_v36 }
 0x4c2   : > { %v5458_v54 = vrot.slane %v5457_v50, 2 }
 0x4c4   : > { %v5459_v56 = vadd.f32 %v5458_v54, %v5457_v50 }
 0x4c6   : > { %v5460_v62 = vrot.slane %v5459_v56, 1 }
 0x4c8   : > { %v5461_v63 = vadd.f32 %v5460_v62, %v5459_v56 }
 0x4ca   : > { %v5462_v45 = vmax.f32 %v5461_v63, 1e-06 }
 0x4cc   : > { %6859 = vrcp.f32 %v5462_v45 }
 0x4d6   : > { %v6860_v8 = vpop.eup %6859 }
 0x4d7   : > { %v5466_v37 = vmul.f32 %v6860_v8, %v5463_v5  ;;  %v5467_v40 = vmul.f32 %v6860_v8, %v5464_v3 }
 0x4d9   : > { %v5468_v52 = vmul.f32 1.442695, %v5466_v37  ;;  %v5470_v53 = vmul.f32 1.442695, %v5467_v40 }
 0x4db   : > { %6861 = vpow2.f32 %v5468_v52 }
 0x4dc   : > { %6863 = vpow2.f32 %v5470_v53 }
 0x4e5   : > { %v6862_v59 = vpop.eup %6861 }
 0x4e6   : > { %v6864_v61 = vpop.eup %6863  ;;  %v5472_v21 = vsel %vm250_vm0, %v6862_v59, 0.0  ;;  %v5488_v57 = vmul.f32 %v6862_v59, %v5486_v20 }
 0x4e7   : > { %5473 = vadd.xlane.f32.xlu1 %v5472_v21  ;;  %v5489_v55 = vmul.f32 %v6864_v61, %v5487_v13  ;;  %v5475_v23 = vsel %vm250_vm0, %v6864_v61, 0.0 }
 0x4e8   : > { %v5490_v60 = vsel %vm250_vm0, %v5488_v57, 0.0 }
 0x4e9   : > { %5491 = vadd.xlane.f32.xlu0 %v5490_v60  ;;  %v5493_v25 = vsel %vm250_vm0, %v5489_v55, 0.0 }
 0x4eb   : > { %5476 = vadd.xlane.f32.xlu1 %v5475_v23 }
 0x4ef   : > { %5494 = vadd.xlane.f32.xlu1 %v5493_v25 }
 0x574   : > { %v5474_v17 = vpop.xlane.xlu1 %5473 }
 0x576   : > { %v5492_v33 = vpop.xlane.xlu0 %5491 }
 0x578   : > { %v5477_v19 = vpop.xlane.xlu1 %5476 }
 0x579   : > { %v5478_v32 = vadd.f32 %v5477_v19, %v5474_v17 }
 0x57b   : > { %v5479_v44 = vrot.slane %v5478_v32, 4 }
 0x57c   : > { %v5495_v49 = vpop.xlane.xlu1 %5494 }
 0x57d   : > { %v5480_v29 = vadd.f32 %v5479_v44, %v5478_v32  ;;  %v5496_v11 = vadd.f32 %v5495_v49, %v5492_v33 }
 0x57f   : > { %v5481_v7 = vrot.slane %v5480_v29, 2  ;;  %v5497_v15 = vrot.slane %v5496_v11, 4 }
 0x581   : > { %v5482_v39 = vadd.f32 %v5481_v7, %v5480_v29  ;;  %v5498_v51 = vadd.f32 %v5497_v15, %v5496_v11 }
 0x583   : > { %v5483_v14 = vrot.slane %v5482_v39, 1  ;;  %v5499_v41 = vrot.slane %v5498_v51, 2 }
 0x585   : > { %v5484_v58 = vadd.f32 %v5483_v14, %v5482_v39  ;;  %v5500_v0 = vadd.f32 %v5499_v41, %v5498_v51 }
 0x587   : > { %v5485_v18 = vmax.f32 %v5484_v58, 1e-06  ;;  %v5501_v46 = vrot.slane %v5500_v0, 1 }
 0x589   : > { %6865 = vrcp.f32 %v5485_v18  ;;  %v5502_v16 = vadd.f32 %v5501_v46, %v5500_v0 }
 0x58b   : > { %v5503_v4 = vmul.f32 1.5, %v5502_v16 }
 0x593   : > { %v6866_v31 = vpop.eup %6865 }
 0x594   : > { %v5505_v22 = vmul.f32 %v6866_v31, %v5503_v4 }
 0x596   : > { %vm5506_vm1 = vcmp.ne.f32.partialorder %v5505_v22, %v5505_v22 }
 0x597   : > { %v5507_v30 = vsel %vm5506_vm1, 1e-06, %v5505_v22 }
 0x598   : > { %v5611_v1 = vclamps-f32 %v5507_v30, 3.4028235e+38 }
 0x59a   : > { %v5510_v6 = vmax.f32 %v5611_v1, 1e-06 }
 0x59c   : > { %6867 = vrsqrt.f32 %v5510_v6  ;;  %vm5513_vm3 = vcmp.eq.f32.partialorder %v5510_v6, inf  ;;  %v5516_v2 = vand.u32 2147483648, %v5510_v6  ;;  %vm5515_vm4 = vcmp.eq.f32.partialorder %v5510_v6, 0.0 }
 0x5a6   : > { %v6868_v13 = vpop.eup %6867 }
 0x5a7   : > { %v5512_v20 = vmul.f32 %v6868_v13, %v5510_v6 }
 0x5a9   : > { %v5514_v38 = vsel %vm5513_vm3, %v5510_v6, %v5512_v20 }
 0x5aa   : > { %v5517_v10 = vsel %vm5515_vm4, %v5516_v2, %v5514_v38 }
 0x5ab   : > { %5519 = vst.msk [vmem:[%s215_s5] sm:$0x1] %vm5518_vm2, %v5517_v10 }
 0x5ac PF: > { %p14_p9 = scmp.ge.s32.totalorder %s7119_s27, 4   ;;  %s7799_s12 = smov %s6985_s13 }
 0x5ad   : > { %s7800_s13 = smov %s6989_s14  ;;  %s7801_s14 = smov %s7130_s30 }
 0x5ae   : > { %s7802_s15 = smov %s7119_s27  ;;  %16 = sbr.rel (!%p14_p9) target bundleno = 4 (0x4), region = 82 }
 0x5b5   :  { %5537 = vsyncpa [#allocation3], 1 }
 0x5b6   :  { %5539 = vsyncpa [#allocation3 + $0x1], 1 }
 0x5b7   :  { %5540 = vsyncpa [#allocation5], 1 }

</bundles_post_ra>
